<compile_context>
chip_gen: v7x
topology: tpu7x:2x2x1
jax: 0.10.0
libtpu: 0.0.40
codegen_flags: <defaults>
</compile_context>

<pallas_src>
import jax
import jax.numpy as jnp
from jax.experimental import pallas as pl
from jax.experimental.pallas import tpu as pltpu

H1, H2, H3_TRUE, H3_PAD, OUT_PAD = 1024, 512, 300, 384, 128


def _round_up(x, m):
    return ((x + m - 1) // m) * m


def _choose_tile(batch, cap):
    """Pick (tile_b, padded_batch): one grid step up to `cap` rows, else >=2
    near-equal 8-aligned tiles so the 'parallel' axis can shard across cores."""
    b8 = _round_up(batch, 8)
    if b8 <= cap:
        return b8, b8
    num_tiles = max(2, -(-batch // cap))          # cdiv
    tile_b = _round_up(-(-batch // num_tiles), 8)
    return tile_b, tile_b * num_tiles


def critic_kernel(x_ref, w1_ref, b1_ref, w2a_ref, w2b_ref, b2_ref,
                  w3_ref, b3_ref, w4_ref, b4_ref, out_ref):
    bf, f32 = jnp.bfloat16, jnp.float32
    x = x_ref[...].astype(bf)                                   # (tb, obs+act)

    # FC1 + ReLU  (action rows of w1 are zero, so this is exactly obs @ W1)
    h1 = jnp.dot(x, w1_ref[...], preferred_element_type=f32) + b1_ref[...]
    h1 = jnp.maximum(h1, 0.0)

    # FC2 over concat([h1, acts]) + ReLU, as an exact split matmul
    h2 = (jnp.dot(h1.astype(bf), w2a_ref[...], preferred_element_type=f32)
          + jnp.dot(x, w2b_ref[...], preferred_element_type=f32)
          + b2_ref[...])
    h2 = jnp.maximum(h2, 0.0)

    # FC3 + ReLU  (hidden dim zero-padded 300 -> 384; exact since relu(0)=0)
    h3 = jnp.dot(h2.astype(bf), w3_ref[...], preferred_element_type=f32) + b3_ref[...]
    h3 = jnp.maximum(h3, 0.0)

    # FC4 as a lane-dense 128-wide MXU matmul; only column 0 is real, the
    # wrapper slices it out.  Full-width block -> unmasked stores.
    q = jnp.dot(h3.astype(bf), w4_ref[...], preferred_element_type=f32) + b4_ref[...]
    out_ref[...] = q.astype(out_ref.dtype)


def critic_forward(obs, acts, params, *, tile_cap=1024):
    B = obs.shape[0]
    x = jnp.concatenate([obs, acts], axis=1).astype(jnp.float32)
    in_dim = x.shape[1]
    (w1, b1, w2a, w2b, b2, w3, b3, w4, b4) = params

    tile_b, b_pad = _choose_tile(B, tile_cap)
    if b_pad != B:
        x = jnp.pad(x, ((0, b_pad - B), (0, 0)))
    num_tiles = b_pad // tile_b

    # Weight / bias specs: full-array blocks, constant index -> fetched once
    # and resident across all grid steps.
    def const_spec(arr):
        return pl.BlockSpec(arr.shape, lambda i: (0, 0))

    out = pl.pallas_call(
        critic_kernel,
        out_shape=jax.ShapeDtypeStruct((b_pad, OUT_PAD), jnp.float32),
        grid_spec=pltpu.PrefetchScalarGridSpec(
            num_scalar_prefetch=0,
            grid=(num_tiles,),
            in_specs=[
                pl.BlockSpec((tile_b, in_dim), lambda i: (i, 0)),   # packed x
                const_spec(w1), const_spec(b1),
                const_spec(w2a), const_spec(w2b), const_spec(b2),
                const_spec(w3), const_spec(b3),
                const_spec(w4), const_spec(b4),
            ],
            out_specs=pl.BlockSpec((tile_b, OUT_PAD), lambda i: (i, 0)),
        ),
        compiler_params=pltpu.CompilerParams(
            dimension_semantics=("parallel",),
            vmem_limit_bytes=64 * 1024 * 1024,
        ),
    )(x, w1, b1, w2a, w2b, b2, w3, b3, w4, b4)

    return out[:B, 0:1]


def init_params(key, obs_dim, act_dim):
    """Deterministic init matching the nn.Linear shapes of CriticNet.

    Weights are stored bf16, transposed to (in, out) and zero-padded so that
    the kernel needs no in-kernel slicing; biases stay f32.  All padding is
    mathematically exact (padded rows/cols are zero, relu(0)=0)."""
    def linear(k, fan_in, fan_out):
        kw, kb = jax.random.split(k)
        bound = 1.0 / (fan_in ** 0.5)
        w = jax.random.uniform(kw, (fan_in, fan_out), jnp.float32, -bound, bound)
        b = jax.random.uniform(kb, (1, fan_out), jnp.float32, -bound, bound)
        return w, b

    k1, k2, k3, k4 = jax.random.split(key, 4)
    w1, b1 = linear(k1, obs_dim, H1)
    w2, b2 = linear(k2, H1 + act_dim, H2)
    w3, b3 = linear(k3, H2, H3_TRUE)
    w4, b4 = linear(k4, H3_TRUE, 1)

    in_dim = obs_dim + act_dim
    # FC1 lifted onto the packed [obs, acts] input: action rows are zero.
    w1p = jnp.zeros((in_dim, H1), jnp.float32).at[:obs_dim].set(w1)
    # FC2 split: part that multiplies h1 and part that multiplies the packed
    # input (observation rows zero -> exactly acts @ W2[1024:]).
    w2a = w2[:H1]
    w2b = jnp.zeros((in_dim, H2), jnp.float32).at[obs_dim:].set(w2[H1:])
    # FC3: lane-align the hidden dim 300 -> 384 with zeros.
    pad3 = H3_PAD - H3_TRUE
    w3p = jnp.pad(w3, ((0, 0), (0, pad3)))
    b3p = jnp.pad(b3, ((0, 0), (0, pad3)))
    # FC4 as a lane-dense (384, 128) matmul weight; real output is column 0.
    w4p = jnp.zeros((H3_PAD, OUT_PAD), jnp.float32).at[:H3_TRUE, 0:1].set(w4)
    b4p = jnp.zeros((1, OUT_PAD), jnp.float32).at[:, 0:1].set(b4)

    bf = jnp.bfloat16
    return (w1p.astype(bf), b1,
            w2a.astype(bf), w2b.astype(bf), b2,
            w3p.astype(bf), b3p,
            w4p.astype(bf), b4p)


def reference_forward(obs, acts, params):
    """Pure-JAX reference using the same bf16-weight / f32-accumulate recipe."""
    (w1, b1, w2a, w2b, b2, w3, b3, w4, b4) = params
    bf, f32 = jnp.bfloat16, jnp.float32
    x = jnp.concatenate([obs, acts], axis=1).astype(bf)

    def mm(a, w):
        return jnp.dot(a, w, preferred_element_type=f32)

    h1 = jax.nn.relu(mm(x, w1) + b1)
    h2 = jax.nn.relu(mm(h1.astype(bf), w2a) + mm(x, w2b) + b2)
    h3 = jax.nn.relu(mm(h2.astype(bf), w3) + b3)
    q = mm(h3.astype(bf), w4) + b4
    return q[:, 0:1]


if __name__ == "__main__":
    obs_dim, act_dim, batch = 16, 8, 16
    key = jax.random.PRNGKey(0)
    k_obs, k_act, k_par = jax.random.split(key, 3)

    obs = jax.random.normal(k_obs, (batch, obs_dim), jnp.float32)
    acts = jax.random.normal(k_act, (batch, act_dim), jnp.float32)
    params = init_params(k_par, obs_dim, act_dim)

    out = jax.block_until_ready(critic_forward(obs, acts, params))
    ref = reference_forward(obs, acts, params)

    assert out.shape == (batch, 1)
    max_err = float(jnp.max(jnp.abs(out - ref)))
    assert jnp.allclose(out, ref, atol=1e-2, rtol=1e-2), max_err

    print("KERNEL_OK")
</pallas_src>

<mosaic_0001>
module attributes {stable_mosaic.version = 11 : i64} {
  func.func @critic_kernel(%arg0: i32, %arg1: memref<16x24xf32, #tpu.memory_space<vmem>>, %arg2: memref<24x1024xbf16, #tpu.memory_space<vmem>>, %arg3: memref<1x1024xf32, #tpu.memory_space<vmem>>, %arg4: memref<1024x512xbf16, #tpu.memory_space<vmem>>, %arg5: memref<24x512xbf16, #tpu.memory_space<vmem>>, %arg6: memref<1x512xf32, #tpu.memory_space<vmem>>, %arg7: memref<512x384xbf16, #tpu.memory_space<vmem>>, %arg8: memref<1x384xf32, #tpu.memory_space<vmem>>, %arg9: memref<384x128xbf16, #tpu.memory_space<vmem>>, %arg10: memref<1x128xf32, #tpu.memory_space<vmem>>, %arg11: memref<16x128xf32, #tpu.memory_space<vmem>>) attributes {dimension_semantics = [#tpu.dimension_semantics<parallel>], iteration_bounds = array<i64: 1>, scalar_prefetch = 0 : i64, scratch_operands = 0 : i64, tpu.core_type = #tpu.core_type<tc>, window_params = [{transform_indices = @transform_0, window_bounds = array<i64: 16, 24>}, {pipeline_mode = #tpu.pipeline_mode<synchronous>, transform_indices = @transform_1, window_bounds = array<i64: 24, 1024>}, {pipeline_mode = #tpu.pipeline_mode<synchronous>, transform_indices = @transform_2, window_bounds = array<i64: 1, 1024>}, {pipeline_mode = #tpu.pipeline_mode<synchronous>, transform_indices = @transform_3, window_bounds = array<i64: 1024, 512>}, {pipeline_mode = #tpu.pipeline_mode<synchronous>, transform_indices = @transform_4, window_bounds = array<i64: 24, 512>}, {pipeline_mode = #tpu.pipeline_mode<synchronous>, transform_indices = @transform_5, window_bounds = array<i64: 1, 512>}, {pipeline_mode = #tpu.pipeline_mode<synchronous>, transform_indices = @transform_6, window_bounds = array<i64: 512, 384>}, {pipeline_mode = #tpu.pipeline_mode<synchronous>, transform_indices = @transform_7, window_bounds = array<i64: 1, 384>}, {pipeline_mode = #tpu.pipeline_mode<synchronous>, transform_indices = @transform_8, window_bounds = array<i64: 384, 128>}, {pipeline_mode = #tpu.pipeline_mode<synchronous>, transform_indices = @transform_9, window_bounds = array<i64: 1, 128>}, {transform_indices = @transform_10, window_bounds = array<i64: 16, 128>}]} {
    %c0 = arith.constant 0 : index
    %c0_0 = arith.constant 0 : index
    %0 = vector.load %arg1[%c0, %c0_0] : memref<16x24xf32, #tpu.memory_space<vmem>>, vector<16x24xf32>
    %1 = arith.truncf %0 : vector<16x24xf32> to vector<16x24xbf16>
    %c0_1 = arith.constant 0 : index
    %c0_2 = arith.constant 0 : index
    %2 = vector.load %arg2[%c0_1, %c0_2] : memref<24x1024xbf16, #tpu.memory_space<vmem>>, vector<24x1024xbf16>
    %cst = arith.constant dense<0.000000e+00> : vector<16x1024xf32>
    %3 = tpu.matmul %1, %2, %cst {dimension_numbers = #tpu.dot_dimension_numbers<[1], [0], [0], [1], [0, 0, 1, 1], [], []>} : vector<16x24xbf16>, vector<24x1024xbf16>, vector<16x1024xf32> -> vector<16x1024xf32>
    %c0_3 = arith.constant 0 : index
    %c0_4 = arith.constant 0 : index
    %4 = vector.load %arg3[%c0_3, %c0_4] : memref<1x1024xf32, #tpu.memory_space<vmem>>, vector<1x1024xf32>
    %5 = vector.broadcast %4 : vector<1x1024xf32> to vector<16x1024xf32>
    %6 = arith.addf %3, %5 : vector<16x1024xf32>
    %cst_5 = arith.constant 0.000000e+00 : f32
    %7 = vector.broadcast %cst_5 : f32 to vector<16x1024xf32>
    %8 = arith.maximumf %6, %7 : vector<16x1024xf32>
    %9 = arith.truncf %8 : vector<16x1024xf32> to vector<16x1024xbf16>
    %c0_6 = arith.constant 0 : index
    %c0_7 = arith.constant 0 : index
    %10 = vector.load %arg4[%c0_6, %c0_7] : memref<1024x512xbf16, #tpu.memory_space<vmem>>, vector<1024x512xbf16>
    %cst_8 = arith.constant dense<0.000000e+00> : vector<16x512xf32>
    %11 = tpu.matmul %9, %10, %cst_8 {dimension_numbers = #tpu.dot_dimension_numbers<[1], [0], [0], [1], [0, 0, 1, 1], [], []>} : vector<16x1024xbf16>, vector<1024x512xbf16>, vector<16x512xf32> -> vector<16x512xf32>
    %c0_9 = arith.constant 0 : index
    %c0_10 = arith.constant 0 : index
    %12 = vector.load %arg5[%c0_9, %c0_10] : memref<24x512xbf16, #tpu.memory_space<vmem>>, vector<24x512xbf16>
    %cst_11 = arith.constant dense<0.000000e+00> : vector<16x512xf32>
    %13 = tpu.matmul %1, %12, %cst_11 {dimension_numbers = #tpu.dot_dimension_numbers<[1], [0], [0], [1], [0, 0, 1, 1], [], []>} : vector<16x24xbf16>, vector<24x512xbf16>, vector<16x512xf32> -> vector<16x512xf32>
    %14 = arith.addf %11, %13 : vector<16x512xf32>
    %c0_12 = arith.constant 0 : index
    %c0_13 = arith.constant 0 : index
    %15 = vector.load %arg6[%c0_12, %c0_13] : memref<1x512xf32, #tpu.memory_space<vmem>>, vector<1x512xf32>
    %16 = vector.broadcast %15 : vector<1x512xf32> to vector<16x512xf32>
    %17 = arith.addf %14, %16 : vector<16x512xf32>
    %cst_14 = arith.constant 0.000000e+00 : f32
    %18 = vector.broadcast %cst_14 : f32 to vector<16x512xf32>
    %19 = arith.maximumf %17, %18 : vector<16x512xf32>
    %20 = arith.truncf %19 : vector<16x512xf32> to vector<16x512xbf16>
    %c0_15 = arith.constant 0 : index
    %c0_16 = arith.constant 0 : index
    %21 = vector.load %arg7[%c0_15, %c0_16] : memref<512x384xbf16, #tpu.memory_space<vmem>>, vector<512x384xbf16>
    %cst_17 = arith.constant dense<0.000000e+00> : vector<16x384xf32>
    %22 = tpu.matmul %20, %21, %cst_17 {dimension_numbers = #tpu.dot_dimension_numbers<[1], [0], [0], [1], [0, 0, 1, 1], [], []>} : vector<16x512xbf16>, vector<512x384xbf16>, vector<16x384xf32> -> vector<16x384xf32>
    %c0_18 = arith.constant 0 : index
    %c0_19 = arith.constant 0 : index
    %23 = vector.load %arg8[%c0_18, %c0_19] : memref<1x384xf32, #tpu.memory_space<vmem>>, vector<1x384xf32>
    %24 = vector.broadcast %23 : vector<1x384xf32> to vector<16x384xf32>
    %25 = arith.addf %22, %24 : vector<16x384xf32>
    %cst_20 = arith.constant 0.000000e+00 : f32
    %26 = vector.broadcast %cst_20 : f32 to vector<16x384xf32>
    %27 = arith.maximumf %25, %26 : vector<16x384xf32>
    %28 = arith.truncf %27 : vector<16x384xf32> to vector<16x384xbf16>
    %c0_21 = arith.constant 0 : index
    %c0_22 = arith.constant 0 : index
    %29 = vector.load %arg9[%c0_21, %c0_22] : memref<384x128xbf16, #tpu.memory_space<vmem>>, vector<384x128xbf16>
    %cst_23 = arith.constant dense<0.000000e+00> : vector<16x128xf32>
    %30 = tpu.matmul %28, %29, %cst_23 {dimension_numbers = #tpu.dot_dimension_numbers<[1], [0], [0], [1], [0, 0, 1, 1], [], []>} : vector<16x384xbf16>, vector<384x128xbf16>, vector<16x128xf32> -> vector<16x128xf32>
    %c0_24 = arith.constant 0 : index
    %c0_25 = arith.constant 0 : index
    %31 = vector.load %arg10[%c0_24, %c0_25] : memref<1x128xf32, #tpu.memory_space<vmem>>, vector<1x128xf32>
    %32 = vector.broadcast %31 : vector<1x128xf32> to vector<16x128xf32>
    %33 = arith.addf %30, %32 : vector<16x128xf32>
    %c0_26 = arith.constant 0 : index
    %c0_27 = arith.constant 0 : index
    %34 = vector.load %arg11[%c0_26, %c0_27] : memref<16x128xf32, #tpu.memory_space<vmem>>, vector<16x128xf32>
    tpu.vector_store %arg11[%c0_26, %c0_27], %33 {strides = array<i32>} : memref<16x128xf32, #tpu.memory_space<vmem>>, vector<16x128xf32>,
    return
  }
  func.func @transform_0(%arg0: i32) -> (i32, i32) {
    %c0_i32 = arith.constant 0 : i32
    %c0_i32_0 = arith.constant 0 : i32
    return %arg0, %c0_i32 : i32, i32
  }
  func.func @transform_1(%arg0: i32) -> (i32, i32) {
    %c0_i32 = arith.constant 0 : i32
    %c0_i32_0 = arith.constant 0 : i32
    %c0_i32_1 = arith.constant 0 : i32
    return %c0_i32, %c0_i32_0 : i32, i32
  }
  func.func @transform_2(%arg0: i32) -> (i32, i32) {
    %c0_i32 = arith.constant 0 : i32
    %c0_i32_0 = arith.constant 0 : i32
    %c0_i32_1 = arith.constant 0 : i32
    return %c0_i32, %c0_i32_0 : i32, i32
  }
  func.func @transform_3(%arg0: i32) -> (i32, i32) {
    %c0_i32 = arith.constant 0 : i32
    %c0_i32_0 = arith.constant 0 : i32
    %c0_i32_1 = arith.constant 0 : i32
    return %c0_i32, %c0_i32_0 : i32, i32
  }
  func.func @transform_4(%arg0: i32) -> (i32, i32) {
    %c0_i32 = arith.constant 0 : i32
    %c0_i32_0 = arith.constant 0 : i32
    %c0_i32_1 = arith.constant 0 : i32
    return %c0_i32, %c0_i32_0 : i32, i32
  }
  func.func @transform_5(%arg0: i32) -> (i32, i32) {
    %c0_i32 = arith.constant 0 : i32
    %c0_i32_0 = arith.constant 0 : i32
    %c0_i32_1 = arith.constant 0 : i32
    return %c0_i32, %c0_i32_0 : i32, i32
  }
  func.func @transform_6(%arg0: i32) -> (i32, i32) {
    %c0_i32 = arith.constant 0 : i32
    %c0_i32_0 = arith.constant 0 : i32
    %c0_i32_1 = arith.constant 0 : i32
    return %c0_i32, %c0_i32_0 : i32, i32
  }
  func.func @transform_7(%arg0: i32) -> (i32, i32) {
    %c0_i32 = arith.constant 0 : i32
    %c0_i32_0 = arith.constant 0 : i32
    %c0_i32_1 = arith.constant 0 : i32
    return %c0_i32, %c0_i32_0 : i32, i32
  }
  func.func @transform_8(%arg0: i32) -> (i32, i32) {
    %c0_i32 = arith.constant 0 : i32
    %c0_i32_0 = arith.constant 0 : i32
    %c0_i32_1 = arith.constant 0 : i32
    return %c0_i32, %c0_i32_0 : i32, i32
  }
  func.func @transform_9(%arg0: i32) -> (i32, i32) {
    %c0_i32 = arith.constant 0 : i32
    %c0_i32_0 = arith.constant 0 : i32
    %c0_i32_1 = arith.constant 0 : i32
    return %c0_i32, %c0_i32_0 : i32, i32
  }
  func.func @transform_10(%arg0: i32) -> (i32, i32) {
    %c0_i32 = arith.constant 0 : i32
    %c0_i32_0 = arith.constant 0 : i32
    return %arg0, %c0_i32 : i32, i32
  }
}

</mosaic_0001>

<bundles_post_ra>
// kernel: tpu_custom_call.1
= control target key start
LH: loop header
LB: loop body
LE: loop exit
PB: predicated region body
PF: predicated region fallthrough
CT: control target
= control target key end

     0   :  { %15 = vsyncpa [#allocation3], 0  ;;  %s5411_s0 = inlined_call_operand.hbm [shape: f32[16,24], index: 0, kind: input, shape index: {}]   ;;  %s5412_s1 = inlined_call_operand.hbm [shape: bf16[24,1024], index: 1, kind: input, shape index: {}]   ;;  %s5413_s2 = inlined_call_operand.hbm [shape: f32[1,1024], index: 2, kind: input, shape index: {}]   ;;  %s5414_s3 = inlined_call_operand.hbm [shape: bf16[1024,512], index: 3, kind: input, shape index: {}]   ;;  %s5415_s4 = inlined_call_operand.hbm [shape: bf16[24,512], index: 4, kind: input, shape index: {}]   ;;  %s5416_s5 = inlined_call_operand.hbm [shape: f32[1,512], index: 5, kind: input, shape index: {}]   ;;  %s5417_s6 = inlined_call_operand.hbm [shape: bf16[512,384], index: 6, kind: input, shape index: {}]   ;;  %s5418_s7 = inlined_call_operand.hbm [shape: f32[1,384], index: 7, kind: input, shape index: {}]   ;;  %s5419_s8 = inlined_call_operand.hbm [shape: bf16[384,128], index: 8, kind: input, shape index: {}]   ;;  %s5420_s9 = inlined_call_operand.hbm [shape: f32[1,128], index: 9, kind: input, shape index: {}]   ;;  %s5421_s10 = inlined_call_operand.hbm [shape: f32[16,128], index: 10, kind: output, shape index: {}]  }
   0x1   :  { %16 = vsyncpa [#allocation6], 0 }
   0x2   :  { %17 = vsyncpa [#allocation9], 0 }
   0x3   :  { %18 = vsyncpa [#allocation12], 0 }
   0x4   :  { %19 = vsyncpa [#allocation15], 0 }
   0x5   :  { %20 = vsyncpa [#allocation18], 0 }
   0x6   :  { %21 = vsyncpa [#allocation4], 0  ;;  %s5084_s13 = smov [#allocation5]   ;;  %s4828_s17 = scalar_lea.hbm %s5412_s1, 1536 }
   0x7   :  { %s39_s14 = sshll.u32 %s5084_s13, 4  ;;  %p4829_p0 = scmp.ne.s32.totalorder %s5412_s1, %s4828_s17  ;;  %s40_s14 = int_to_ptr.vmem [resolvable:$true] %s39_s14 }
   0x8   :  { %p4832_p1 = scmp.lt.u32.totalorder %s4828_s17, %s5412_s1 }
   0xa   :  { %p4834_p2 = pnand %p4832_p1, %p4829_p0 }
   0xc   :  { %4837 = shalt.err (!%p4834_p2)
}
   0xd   :  { %s4838_s22 = scalar_lea.vmem %s40_s14, 1536  ;;  %p4843_p4 = scmp.lt.s32.totalorder %s40_s14, %s40_s14 }
   0xe   :  { %p4839_p3 = scmp.ne.s32.totalorder %s40_s14, %s4838_s22  ;;  %p4844_p5 = scmp.lt.s32.totalorder %s4838_s22, %s4838_s22 }
  0x10   :  { %p4845_p6 = por %p4844_p5, %p4843_p4 }
  0x12   :  { %p4846_p7 = pnand %p4845_p6, %p4839_p3 }
  0x14   :  { %4849 = shalt.err (!%p4846_p7)
}
  0x15   :  { %s5085_s23 = smov 512   ;;  %s5086_s24 = smov 32  }
  0x16   :  { %45 = dma.hbm_to_vmem [thread:$0]  %s5412_s1, 1536, %s40_s14, [#allocation6], %s5085_s23, %s5085_s23, %s5086_s24  }
  0x17   :  { %s5087_s27 = smov [#allocation8]   ;;  %s4850_s11 = scalar_lea.hbm %s5414_s3, 32768 }
  0x18   :  { %s61_s28 = sshll.u32 %s5087_s27, 4  ;;  %p4851_p8 = scmp.ne.s32.totalorder %s5414_s3, %s4850_s11  ;;  %s62_s28 = int_to_ptr.vmem [resolvable:$true] %s61_s28 }
  0x19   :  { %p4854_p9 = scmp.lt.u32.totalorder %s4850_s11, %s5414_s3 }
  0x1b   :  { %p4856_p10 = pnand %p4854_p9, %p4851_p8 }
  0x1d   :  { %4859 = shalt.err (!%p4856_p10)
}
  0x1e   :  { %s4860_s17 = scalar_lea.vmem %s62_s28, 32768  ;;  %p4865_p12 = scmp.lt.s32.totalorder %s62_s28, %s62_s28 }
  0x1f   :  { %p4861_p11 = scmp.ne.s32.totalorder %s62_s28, %s4860_s17  ;;  %p4866_p13 = scmp.lt.s32.totalorder %s4860_s17, %s4860_s17 }
  0x21   :  { %p4867_p0 = por %p4866_p13, %p4865_p12 }
  0x23   :  { %p4868_p1 = pnand %p4867_p0, %p4861_p11 }
  0x25   :  { %4871 = shalt.err (!%p4868_p1)
}
  0x26   :  { %s5088_s1 = smov 256   ;;  %s5089_s14 = smov 16  }
  0x27   :  { %67 = dma.hbm_to_vmem [thread:$0]  %s5414_s3, 32768, %s62_s28, [#allocation9], %s5088_s1, %s5088_s1, %s5089_s14  }
  0x28   :  { %s5090_s20 = smov [#allocation11]   ;;  %s5091_s22 = smov [#allocation14]  }
  0x29   :  { %s86_s21 = sshll.u32 %s5090_s20, 4  ;;  %s108_s23 = sshll.u32 %s5091_s22, 4  ;;  %s87_s21 = int_to_ptr.vmem [resolvable:$true] %s86_s21  ;;  %s109_s23 = int_to_ptr.vmem [resolvable:$true] %s108_s23 }
  0x2a   :  { %s4872_s26 = scalar_lea.hbm %s5416_s5, 64 }
  0x2b   :  { %p4873_p2 = scmp.ne.s32.totalorder %s5416_s5, %s4872_s26  ;;  %p4876_p3 = scmp.lt.u32.totalorder %s4872_s26, %s5416_s5 }
  0x2d   :  { %p4878_p4 = pnand %p4876_p3, %p4873_p2 }
  0x2f   :  { %4881 = shalt.err (!%p4878_p4)
}
  0x30   :  { %s4882_s3 = scalar_lea.vmem %s87_s21, 64  ;;  %p4887_p6 = scmp.lt.s32.totalorder %s87_s21, %s87_s21 }
  0x31   :  { %p4883_p5 = scmp.ne.s32.totalorder %s87_s21, %s4882_s3  ;;  %p4888_p7 = scmp.lt.s32.totalorder %s4882_s3, %s4882_s3 }
  0x33   :  { %p4889_p8 = por %p4888_p7, %p4887_p6 }
  0x35   :  { %p4890_p9 = pnand %p4889_p8, %p4883_p5 }
  0x37   :  { %4893 = shalt.err (!%p4890_p9)
}
  0x38   :  { %89 = dma.hbm_to_vmem [thread:$0]  %s5416_s5, 64, %s87_s21, [#allocation12]  }
  0x39   :  { %s4894_s16 = scalar_lea.hbm %s5418_s7, 48 }
  0x3a   :  { %p4895_p10 = scmp.ne.s32.totalorder %s5418_s7, %s4894_s16  ;;  %p4898_p11 = scmp.lt.u32.totalorder %s4894_s16, %s5418_s7 }
  0x3c   :  { %p4900_p12 = pnand %p4898_p11, %p4895_p10 }
  0x3e   :  { %4903 = shalt.err (!%p4900_p12)
}
  0x3f   :  { %s4904_s22 = scalar_lea.vmem %s109_s23, 48  ;;  %s4908_s24 = scalar_lea.vmem %s109_s23, 64 }
  0x40   :  { %p4905_p13 = scmp.ne.s32.totalorder %s109_s23, %s4904_s22  ;;  %p4909_p0 = scmp.lt.s32.totalorder %s109_s23, %s109_s23 }
  0x41   :  { %p4910_p1 = scmp.lt.s32.totalorder %s4908_s24, %s4904_s22 }
  0x43   :  { %p4911_p2 = por %p4910_p1, %p4909_p0 }
  0x45   :  { %p4912_p3 = pnand %p4911_p2, %p4905_p13 }
  0x47   :  { %4915 = shalt.err (!%p4912_p3)
}
  0x48   :  { %111 = dma.hbm_to_vmem [thread:$0]  %s5418_s7, 48, %s109_s23, [#allocation15]  }
  0x49   :  { %s5092_s25 = smov [#allocation2]   ;;  %s4916_s30 = scalar_lea.hbm %s5411_s0, 256 }
  0x4a   :  { %s27_s26 = sshll.u32 %s5092_s25, 4  ;;  %p4917_p4 = scmp.ne.s32.totalorder %s5411_s0, %s4916_s30  ;;  %s28_s26 = int_to_ptr.vmem [resolvable:$true] %s27_s26 }
  0x4b   :  { %p4920_p5 = scmp.lt.u32.totalorder %s4916_s30, %s5411_s0 }
  0x4d   :  { %p4922_p6 = pnand %p4920_p5, %p4917_p4 }
  0x4f   :  { %4925 = shalt.err (!%p4922_p6)
}
  0x50   :  { %s4926_s13 = scalar_lea.vmem %s28_s26, 256  ;;  %p4931_p8 = scmp.lt.s32.totalorder %s28_s26, %s28_s26 }
  0x51   :  { %p4927_p7 = scmp.ne.s32.totalorder %s28_s26, %s4926_s13  ;;  %p4932_p9 = scmp.lt.s32.totalorder %s4926_s13, %s4926_s13 }
  0x53   :  { %p4933_p10 = por %p4932_p9, %p4931_p8 }
  0x55   :  { %p4934_p11 = pnand %p4933_p10, %p4927_p7 }
  0x57   :  { %4937 = shalt.err (!%p4934_p11)
}
  0x58   :  { %s5093_s7 = smov 128   ;;  %s5094_s23 = smov 8  }
  0x59   :  { %33 = dma.hbm_to_vmem [thread:$0]  %s5411_s0, 256, %s28_s26, [#allocation3], %s5093_s7, %s5093_s7, %s5094_s23  }
  0x5a   :  { %s5095_s17 = smov [#allocation7]   ;;  %s5096_s19 = smov [#allocation10]  }
  0x5b   :  { %s52_s18 = sshll.u32 %s5095_s17, 4  ;;  %s73_s20 = sshll.u32 %s5096_s19, 4  ;;  %s53_s18 = int_to_ptr.vmem [resolvable:$true] %s52_s18  ;;  %s74_s20 = int_to_ptr.vmem [resolvable:$true] %s73_s20 }
  0x5c   :  { %s4938_s5 = scalar_lea.hbm %s5413_s2, 128 }
  0x5d   :  { %p4939_p12 = scmp.ne.s32.totalorder %s5413_s2, %s4938_s5  ;;  %p4942_p13 = scmp.lt.u32.totalorder %s4938_s5, %s5413_s2 }
  0x5f   :  { %p4944_p0 = pnand %p4942_p13, %p4939_p12 }
  0x61   :  { %4947 = shalt.err (!%p4944_p0)
}
  0x62   :  { %s4948_s0 = scalar_lea.vmem %s53_s18, 128  ;;  %p4953_p2 = scmp.lt.s32.totalorder %s53_s18, %s53_s18 }
  0x63   :  { %p4949_p1 = scmp.ne.s32.totalorder %s53_s18, %s4948_s0  ;;  %p4954_p3 = scmp.lt.s32.totalorder %s4948_s0, %s4948_s0 }
  0x65   :  { %p4955_p4 = por %p4954_p3, %p4953_p2 }
  0x67   :  { %p4956_p5 = pnand %p4955_p4, %p4949_p1 }
  0x69   :  { %4959 = shalt.err (!%p4956_p5)
}
  0x6a   :  { %55 = dma.hbm_to_vmem [thread:$0]  %s5413_s2, 128, %s53_s18, [#allocation6]  }
  0x6b   :  { %s4960_s28 = scalar_lea.hbm %s5415_s4, 768 }
  0x6c   :  { %p4961_p6 = scmp.ne.s32.totalorder %s5415_s4, %s4960_s28  ;;  %p4964_p7 = scmp.lt.u32.totalorder %s4960_s28, %s5415_s4 }
  0x6e   :  { %p4966_p8 = pnand %p4964_p7, %p4961_p6 }
  0x70   :  { %4969 = shalt.err (!%p4966_p8)
}
  0x71   :  { %s4970_s17 = scalar_lea.vmem %s74_s20, 768  ;;  %p4975_p10 = scmp.lt.s32.totalorder %s74_s20, %s74_s20 }
  0x72   :  { %p4971_p9 = scmp.ne.s32.totalorder %s74_s20, %s4970_s17  ;;  %p4976_p11 = scmp.lt.s32.totalorder %s4970_s17, %s4970_s17 }
  0x74   :  { %p4977_p12 = por %p4976_p11, %p4975_p10 }
  0x76   :  { %p4978_p13 = pnand %p4977_p12, %p4971_p9 }
  0x78   :  { %4981 = shalt.err (!%p4978_p13)
}
  0x79   :  { %79 = dma.hbm_to_vmem [thread:$0]  %s5415_s4, 768, %s74_s20, [#allocation9], %s5088_s1, %s5088_s1, %s5089_s14  }
  0x7a   :  { %s5097_s19 = smov [#allocation13]   ;;  %s4982_s21 = scalar_lea.hbm %s5417_s6, 12288 }
  0x7b   :  { %s95_s22 = sshll.u32 %s5097_s19, 4  ;;  %p4983_p0 = scmp.ne.s32.totalorder %s5417_s6, %s4982_s21  ;;  %s96_s22 = int_to_ptr.vmem [resolvable:$true] %s95_s22 }
  0x7c   :  { %p4986_p1 = scmp.lt.u32.totalorder %s4982_s21, %s5417_s6 }
  0x7e   :  { %p4988_p2 = pnand %p4986_p1, %p4983_p0 }
  0x80   :  { %4991 = shalt.err (!%p4988_p2)
}
  0x81   :  { %s4992_s26 = scalar_lea.vmem %s96_s22, 12288  ;;  %p4997_p4 = scmp.lt.s32.totalorder %s96_s22, %s96_s22 }
  0x82   :  { %p4993_p3 = scmp.ne.s32.totalorder %s96_s22, %s4992_s26  ;;  %p4998_p5 = scmp.lt.s32.totalorder %s4992_s26, %s4992_s26 }
  0x84   :  { %p4999_p6 = por %p4998_p5, %p4997_p4 }
  0x86   :  { %p5000_p7 = pnand %p4999_p6, %p4993_p3 }
  0x88   :  { %5003 = shalt.err (!%p5000_p7)
}
  0x89   :  { %s5098_s4 = smov 192   ;;  %s5099_s1 = smov 12  }
  0x8a   :  { %101 = dma.hbm_to_vmem [thread:$0]  %s5417_s6, 12288, %s96_s22, [#allocation12], %s5098_s4, %s5098_s4, %s5099_s1  }
  0x8b   :  { %s5100_s30 = smov [#allocation16]   ;;  %s5004_s12 = scalar_lea.hbm %s5419_s8, 3072 }
  0x8c   :  { %s117_s11 = sshll.u32 %s5100_s30, 4  ;;  %p5005_p8 = scmp.ne.s32.totalorder %s5419_s8, %s5004_s12  ;;  %s118_s11 = int_to_ptr.vmem [resolvable:$true] %s117_s11 }
  0x8d   :  { %p5008_p9 = scmp.lt.u32.totalorder %s5004_s12, %s5419_s8 }
  0x8f   :  { %p5010_p10 = pnand %p5008_p9, %p5005_p8 }
  0x91   :  { %5013 = shalt.err (!%p5010_p10)
}
  0x92   :  { %s5014_s2 = scalar_lea.vmem %s118_s11, 3072  ;;  %p5019_p12 = scmp.lt.s32.totalorder %s118_s11, %s118_s11 }
  0x93   :  { %p5015_p11 = scmp.ne.s32.totalorder %s118_s11, %s5014_s2  ;;  %p5020_p13 = scmp.lt.s32.totalorder %s5014_s2, %s5014_s2 }
  0x95   :  { %p5021_p0 = por %p5020_p13, %p5019_p12 }
  0x97   :  { %p5022_p1 = pnand %p5021_p0, %p5015_p11 }
  0x99   :  { %5025 = shalt.err (!%p5022_p1)
}
  0x9a   :  { %s5101_s6 = smov 64   ;;  %s5102_s18 = smov 4  }
  0x9b   :  { %123 = dma.hbm_to_vmem [thread:$0]  %s5419_s8, 3072, %s118_s11, [#allocation15], %s5101_s6, %s5101_s6, %s5102_s18  }
  0x9c   :  { %s5103_s24 = smov [#allocation17]   ;;  %s5026_s27 = scalar_lea.hbm %s5420_s9, 16 }
  0x9d   :  { %s130_s5 = sshll.u32 %s5103_s24, 4  ;;  %p5027_p2 = scmp.ne.s32.totalorder %s5420_s9, %s5026_s27  ;;  %s131_s5 = int_to_ptr.vmem [resolvable:$true] %s130_s5 }
  0x9e   :  { %p5030_p3 = scmp.lt.u32.totalorder %s5026_s27, %s5420_s9 }
  0xa0   :  { %p5032_p4 = pnand %p5030_p3, %p5027_p2 }
  0xa2   :  { %5035 = shalt.err (!%p5032_p4)
}
  0xa3   :  { %s5036_s1 = scalar_lea.vmem %s131_s5, 16  ;;  %s5040_s8 = scalar_lea.vmem %s131_s5, 32 }
  0xa4   :  { %p5037_p5 = scmp.ne.s32.totalorder %s131_s5, %s5036_s1  ;;  %p5041_p6 = scmp.lt.s32.totalorder %s131_s5, %s131_s5 }
  0xa5   :  { %p5042_p7 = scmp.lt.s32.totalorder %s5040_s8, %s5036_s1 }
  0xa7   :  { %p5043_p8 = por %p5042_p7, %p5041_p6 }
  0xa9   :  { %p5044_p9 = pnand %p5043_p8, %p5037_p5 }
  0xab   :  { %5047 = shalt.err (!%p5044_p9)
}
  0xac   :  { %133 = dma.hbm_to_vmem [thread:$0]  %s5420_s9, 16, %s131_s5, [#allocation18]  }
  0xad   :  { %5070 = dma.done.wait [#allocation3], 256  }
  0xae   :  { %5071 = vsyncadd [#allocation3], 4294967040 }
  0xaf   :  { %5072 = dma.done.wait [#allocation6], 1664  }
  0xb0   :  { %5073 = vsyncadd [#allocation6], 4294965632 }
  0xb1   :  { %5074 = dma.done.wait [#allocation9], 33536  }
  0xb2   :  { %5075 = vsyncadd [#allocation9], 4294933760 }
  0xb3   :  { %5076 = dma.done.wait [#allocation12], 12352  }
  0xb4   :  { %5077 = vsyncadd [#allocation12], 4294954944 }
  0xb5   :  { %5078 = dma.done.wait [#allocation15], 3120  }
  0xb6   :  { %5079 = vsyncadd [#allocation15], 4294964176 }
  0xb7   :  { %5080 = dma.done.wait [#allocation18], 16  }
  0xb8   :  { %5081 = vsyncadd [#allocation18], 4294967280  ;;  %v5104_v0 = vmov 0   ;;  %v168_v1 = vld [vmem:[#allocation5] sm:$0xff]  ;;  %v169_v8 = vld [vmem:[#allocation5 + $0x8] sm:$0xff]  ;;  %vm286_vm0 = vcmask 1043456  }
  0xb9   :  { %343 = vmatprep.mubr.bf16.mxu0 %v5104_v0  ;;  %386 = vmatprep.mubr.bf16.mxu1 %v5104_v0  ;;  %v172_v2 = vld [vmem:[#allocation5 + $0x20] sm:$0xff]  ;;  %v173_v9 = vld [vmem:[#allocation5 + $0x28] sm:$0xff]  ;;  %v170_v11 = vld [vmem:[#allocation5 + $0x10] sm:$0xff]  ;;  %vm282_vm1 = vcmask 195584   ;;  %vm5106_vm2 = vmmov 0   ;;  %s5107_s9 = smov [#allocation19]  }
  0xba   :  { %v176_v3 = vld [vmem:[#allocation5 + $0x40] sm:$0xff]  ;;  %v3703_v4 = vcombine.high %v168_v1, %v172_v2  ;;  %v3702_v5 = vcombine.low %v168_v1, %v172_v2  ;;  %v177_v10 = vld [vmem:[#allocation5 + $0x48] sm:$0xff]  ;;  %v165_v12 = vld [vmem:[#allocation2] sm:$0xff]  ;;  %v3705_v14 = vcombine.high %v169_v8, %v173_v9  ;;  %v3704_v15 = vcombine.low %v169_v8, %v173_v9  ;;  %s3685_s30 = sshll.u32 %s5107_s9, 4  ;;  %s3686_s30 = int_to_ptr.vmem [resolvable:$true] %s3685_s30 }
  0xbb   :  { %v3711_v6 = vcombine.high %v176_v3, %v176_v3  ;;  %v3710_v7 = vcombine.low %v176_v3, %v176_v3  ;;  %v166_v13 = vld [vmem:[#allocation2 + $0x8] sm:$0xff]  ;;  %v3713_v16 = vcombine.high %v177_v10, %v177_v10  ;;  %v174_v17 = vld [vmem:[#allocation5 + $0x30] sm:$0xff]  ;;  %v3712_v18 = vcombine.low %v177_v10, %v177_v10  ;;  %v767_v36 = vld [vmem:[#allocation10 + $0x20] sm:$0xff]  ;;  %s5048_s11 = scalar_lea.vmem %s3686_s30, 256  ;;  %p5053_p11 = scmp.lt.s32.totalorder %s3686_s30, %s3686_s30 }
  0xbc   :  { %311 = vmatprep.subr.bf16.mxu0 %v3703_v4  ;;  %v171_v19 = vld [vmem:[#allocation5 + $0x18] sm:$0xff]  ;;  %354 = vmatprep.subr.bf16.mxu1 %v3705_v14  ;;  %v3707_v22 = vcombine.high %v170_v11, %v174_v17  ;;  %v178_v23 = vld [vmem:[#allocation5 + $0x50] sm:$0xff]  ;;  %v5296_v24 = vpack.c.bf16 %v166_v13, %v165_v12  ;;  %v3706_v27 = vcombine.low %v170_v11, %v174_v17  ;;  %p5049_p10 = scmp.ne.s32.totalorder %s3686_s30, %s5048_s11  ;;  %p5054_p12 = scmp.lt.s32.totalorder %s5048_s11, %s5048_s11 }
  0xbd   :  { %312 = vmatpush1.bf16.msra.mxu0 %v3702_v5  ;;  %v175_v20 = vld [vmem:[#allocation5 + $0x38] sm:$0xff]  ;;  %v288_v21 = vsel %vm286_vm0, %v3710_v7, 0  ;;  %355 = vmatpush1.bf16.msra.mxu1 %v3704_v15  ;;  %v294_v25 = vsel %vm286_vm0, %v3712_v18, 0  ;;  %v3715_v29 = vcombine.high %v178_v23, %v178_v23  ;;  %v3714_v30 = vcombine.low %v178_v23, %v178_v23  ;;  %v4287_v39 = vld [vmem:[#allocation10 + $0xc] ss:$16 sps:$4 sm:$0xff]  }
  0xbe   :  { %3718 = vmatprep.subr.msk.bf16.mxu0 %vm286_vm0, %v3711_v6  ;;  %3720 = vmatprep.subr.msk.bf16.mxu1 %vm286_vm0, %v3713_v16  ;;  %v3709_v26 = vcombine.high %v171_v19, %v175_v20  ;;  %v179_v28 = vld [vmem:[#allocation5 + $0x58] sm:$0xff]  ;;  %v3708_v31 = vcombine.low %v171_v19, %v175_v20  ;;  %v768_v40 = vld [vmem:[#allocation10 + $0x28] sm:$0xff]  ;;  %v3731_v41 = vcombine.high %v767_v36, %v767_v36  ;;  %p5055_p13 = por %p5054_p12, %p5053_p11 }
  0xbf   :  { %v3717_v32 = vcombine.high %v179_v28, %v179_v28  ;;  %v3716_v33 = vcombine.low %v179_v28, %v179_v28  ;;  %v300_v34 = vsel %vm286_vm0, %v3714_v30, 0  ;;  %v4284_v35 = vld [vmem:[#allocation10 + $0x4] ss:$16 sps:$4 sm:$0xff]   ;;  %v4282_v38 = vld [vmem:[#allocation10] ss:$16 sps:$4 sm:$0xff]   ;;  %v3730_v42 = vcombine.low %v767_v36, %v767_v36 }
  0xc0   :  { %v4285_v43 = vld [vmem:[#allocation10 + $0x8] ss:$16 sps:$4 sm:$0xff]   ;;  %v3733_v44 = vcombine.high %v768_v40, %v768_v40  ;;  %v3732_v45 = vcombine.low %v768_v40, %v768_v40  ;;  %v4294_v47 = vld [vmem:[#allocation8 + $0x4] ss:$16 sps:$4 sm:$0xff]   ;;  %v4297_v49 = vld [vmem:[#allocation8 + $0xc] ss:$16 sps:$4 sm:$0xff]   ;;  %p5056_p0 = pnand %p5055_p13, %p5049_p10 }
  0xc1   :  { %314 = vmatpush1.bf16.msra.mxu0 %v288_v21  ;;  %357 = vmatpush1.bf16.msra.mxu1 %v294_v25  ;;  %v306_v37 = vsel %vm286_vm0, %v3716_v33, 0  ;;  %v800_v46 = vsel %vm286_vm0, %v3730_v42, 0  ;;  %v4292_v50 = vld [vmem:[#allocation8] ss:$16 sps:$4 sm:$0xff]   ;;  %v4300_v51 = vld [vmem:[#allocation8 + $0x24] ss:$16 sps:$4 sm:$0xff]  }
  0xc2   :  { %397 = vmatprep.subr.bf16.mxu0 %v3707_v22  ;;  %440 = vmatprep.subr.bf16.mxu1 %v3709_v26  ;;  %v806_v48 = vsel %vm286_vm0, %v3732_v45, 0  ;;  %v4295_v52 = vld [vmem:[#allocation8 + $0x8] ss:$16 sps:$4 sm:$0xff]   ;;  %v4303_v53 = vld [vmem:[#allocation8 + $0x2c] ss:$16 sps:$4 sm:$0xff]  }
  0xc3   :  { %v4298_v54 = vld [vmem:[#allocation8 + $0x20] ss:$16 sps:$4 sm:$0xff]   ;;  %v4306_v55 = vld [vmem:[#allocation8 + $0x44] ss:$16 sps:$4 sm:$0xff]   ;;  %v4301_v56 = vld [vmem:[#allocation8 + $0x28] ss:$16 sps:$4 sm:$0xff]  }
  0xc4   :  { %3719 = vmatmul.mubr.msk.bf16.vlgmr.msra.gmra.mrb[0].mxu0 %vm282_vm1, %v5296_v24  ;;  %3721 = vmatmul.mubr.msk.bf16.vlgmr.msra.gmra.mrb[0].mxu1 %vm282_vm1, %v5296_v24  ;;  %v4309_v57 = vld [vmem:[#allocation8 + $0x4c] ss:$16 sps:$4 sm:$0xff]   ;;  %v4304_v58 = vld [vmem:[#allocation8 + $0x40] ss:$16 sps:$4 sm:$0xff]   ;;  %v4312_v59 = vld [vmem:[#allocation8 + $0x64] ss:$16 sps:$4 sm:$0xff]  }
  0xc5   :  { %398 = vmatpush1.bf16.msra.mxu0 %v3706_v27  ;;  %429 = vmatprep.mubr.bf16.mxu0 %v5104_v0  ;;  %v4307_v60 = vld [vmem:[#allocation8 + $0x48] ss:$16 sps:$4 sm:$0xff]   ;;  %v4315_v61 = vld [vmem:[#allocation8 + $0x6c] ss:$16 sps:$4 sm:$0xff]   ;;  %v4310_v62 = vld [vmem:[#allocation8 + $0x60] ss:$16 sps:$4 sm:$0xff]  }
  0xc6   :  { %3722 = vmatprep.subr.msk.bf16.mxu0 %vm286_vm0, %v3715_v29  ;;  %441 = vmatpush1.bf16.msra.mxu1 %v3708_v31  ;;  %v4318_v63 = vld [vmem:[#allocation8 + $0x84] ss:$16 sps:$4 sm:$0xff]   ;;  %v4321_v1 = vld [vmem:[#allocation8 + $0x8c] ss:$16 sps:$4 sm:$0xff]   ;;  %v4316_v2 = vld [vmem:[#allocation8 + $0x80] ss:$16 sps:$4 sm:$0xff]  }
  0xc7   :  { %472 = vmatprep.mubr.bf16.mxu1 %v5104_v0  ;;  %3724 = vmatprep.subr.msk.bf16.mxu1 %vm286_vm0, %v3717_v32  ;;  %v4324_v3 = vld [vmem:[#allocation8 + $0xa4] ss:$16 sps:$4 sm:$0xff]   ;;  %v4319_v4 = vld [vmem:[#allocation8 + $0x88] ss:$16 sps:$4 sm:$0xff]   ;;  %v4322_v5 = vld [vmem:[#allocation8 + $0xa0] ss:$16 sps:$4 sm:$0xff]  }
  0xc8   :  { %v4327_v6 = vld [vmem:[#allocation8 + $0xac] ss:$16 sps:$4 sm:$0xff]   ;;  %v4325_v7 = vld [vmem:[#allocation8 + $0xa8] ss:$16 sps:$4 sm:$0xff]   ;;  %v4330_v8 = vld [vmem:[#allocation8 + $0xc4] ss:$16 sps:$4 sm:$0xff]  }
  0xc9   :  { %400 = vmatpush1.bf16.msra.mxu0 %v300_v34  ;;  %v4333_v9 = vld [vmem:[#allocation8 + $0xcc] ss:$16 sps:$4 sm:$0xff]   ;;  %v4328_v10 = vld [vmem:[#allocation8 + $0xc0] ss:$16 sps:$4 sm:$0xff]   ;;  %v4336_v11 = vld [vmem:[#allocation8 + $0xe4] ss:$16 sps:$4 sm:$0xff]  }
  0xca   :  { %811 = vmatprep.subr.bf16.mxu0 %v4284_v35  ;;  %443 = vmatpush1.bf16.msra.mxu1 %v306_v37  ;;  %v4331_v12 = vld [vmem:[#allocation8 + $0xc8] ss:$16 sps:$4 sm:$0xff]   ;;  %v4339_v13 = vld [vmem:[#allocation8 + $0xec] ss:$16 sps:$4 sm:$0xff]   ;;  %v4334_v14 = vld [vmem:[#allocation8 + $0xe0] ss:$16 sps:$4 sm:$0xff]  }
  0xcb   :  { %854 = vmatprep.subr.bf16.mxu1 %v4287_v39  ;;  %v4342_v15 = vld [vmem:[#allocation8 + $0x104] ss:$16 sps:$4 sm:$0xff]   ;;  %v4337_v16 = vld [vmem:[#allocation8 + $0xe8] ss:$16 sps:$4 sm:$0xff]   ;;  %v4345_v17 = vld [vmem:[#allocation8 + $0x10c] ss:$16 sps:$4 sm:$0xff]  }
  0xcc   :  { %3723 = vmatmul.mubr.msk.bf16.vlgmr.msra.gmra.mrb[4].mxu0 %vm282_vm1, %v5296_v24  ;;  %v4340_v18 = vld [vmem:[#allocation8 + $0x100] ss:$16 sps:$4 sm:$0xff]   ;;  %v4348_v19 = vld [vmem:[#allocation8 + $0x124] ss:$16 sps:$4 sm:$0xff]   ;;  %v4343_v20 = vld [vmem:[#allocation8 + $0x108] ss:$16 sps:$4 sm:$0xff]  }
  0xcd   :  { %812 = vmatpush1.bf16.msra.mxu0 %v4282_v38  ;;  %843 = vmatprep.mubr.bf16.mxu0 %v5104_v0  ;;  %v4351_v21 = vld [vmem:[#allocation8 + $0x12c] ss:$16 sps:$4 sm:$0xff]   ;;  %v4346_v22 = vld [vmem:[#allocation8 + $0x120] ss:$16 sps:$4 sm:$0xff]   ;;  %v4354_v23 = vld [vmem:[#allocation8 + $0x144] ss:$16 sps:$4 sm:$0xff]  }
  0xce   :  { %3725 = vmatmul.mubr.msk.bf16.vlgmr.msra.gmra.mrb[4].mxu1 %vm282_vm1, %v5296_v24  ;;  %3734 = vmatprep.subr.msk.bf16.mxu0 %vm286_vm0, %v3731_v41  ;;  %v4357_v25 = vld [vmem:[#allocation8 + $0x14c] ss:$16 sps:$4 sm:$0xff]   ;;  %v4352_v26 = vld [vmem:[#allocation8 + $0x140] ss:$16 sps:$4 sm:$0xff]   ;;  %v4360_v27 = vld [vmem:[#allocation8 + $0x164] ss:$16 sps:$4 sm:$0xff]  }
  0xcf   :  { %855 = vmatpush1.bf16.msra.mxu1 %v4285_v43  ;;  %886 = vmatprep.mubr.bf16.mxu1 %v5104_v0  ;;  %v4313_v0 = vld [vmem:[#allocation8 + $0x68] ss:$16 sps:$4 sm:$0xff]   ;;  %v4363_v29 = vld [vmem:[#allocation8 + $0x16c] ss:$16 sps:$4 sm:$0xff]   ;;  %v4358_v30 = vld [vmem:[#allocation8 + $0x160] ss:$16 sps:$4 sm:$0xff]  }
  0xd0   :  { %3736 = vmatprep.subr.msk.bf16.mxu1 %vm286_vm0, %v3733_v44  ;;  %v4355_v28 = vld [vmem:[#allocation8 + $0x148] ss:$16 sps:$4 sm:$0xff]   ;;  %v4366_v31 = vld [vmem:[#allocation8 + $0x184] ss:$16 sps:$4 sm:$0xff]   ;;  %v4369_v33 = vld [vmem:[#allocation8 + $0x18c] ss:$16 sps:$4 sm:$0xff]  }
  0xd1   :  { %814 = vmatpush1.bf16.msra.mxu0 %v800_v46  ;;  %v4361_v32 = vld [vmem:[#allocation8 + $0x168] ss:$16 sps:$4 sm:$0xff]   ;;  %v4364_v34 = vld [vmem:[#allocation8 + $0x180] ss:$16 sps:$4 sm:$0xff]   ;;  %v4372_v35 = vld [vmem:[#allocation8 + $0x1a4] ss:$16 sps:$4 sm:$0xff]  }
  0xd2   :  { %2177 = vmatprep.subr.bf16.mxu0 %v4294_v47  ;;  %v4367_v36 = vld [vmem:[#allocation8 + $0x188] ss:$16 sps:$4 sm:$0xff]   ;;  %v4375_v37 = vld [vmem:[#allocation8 + $0x1ac] ss:$16 sps:$4 sm:$0xff]   ;;  %v4370_v38 = vld [vmem:[#allocation8 + $0x1a0] ss:$16 sps:$4 sm:$0xff]  }
  0xd3   :  { %857 = vmatpush1.bf16.msra.mxu1 %v806_v48  ;;  %v4373_v39 = vld [vmem:[#allocation8 + $0x1a8] ss:$16 sps:$4 sm:$0xff]   ;;  %v4378_v40 = vld [vmem:[#allocation8 + $0x1c4] ss:$16 sps:$4 sm:$0xff]   ;;  %v4381_v41 = vld [vmem:[#allocation8 + $0x1cc] ss:$16 sps:$4 sm:$0xff]  }
  0xd4   :  { %2349 = vmatprep.subr.bf16.mxu1 %v4297_v49  ;;  %3735 = vmatmul.mubr.msk.bf16.vlgmr.msra.gmra.mrb[8].mxu0 %vm282_vm1, %v5296_v24  ;;  %v4376_v42 = vld [vmem:[#allocation8 + $0x1c0] ss:$16 sps:$4 sm:$0xff]   ;;  %v4379_v43 = vld [vmem:[#allocation8 + $0x1c8] ss:$16 sps:$4 sm:$0xff]   ;;  %v4384_v44 = vld [vmem:[#allocation8 + $0x1e4] ss:$16 sps:$4 sm:$0xff]  }
  0xd5   :  { %2178 = vmatpush1.bf16.msra.mxu0 %v4292_v50  ;;  %v4387_v45 = vld [vmem:[#allocation8 + $0x1ec] ss:$16 sps:$4 sm:$0xff]   ;;  %v4382_v46 = vld [vmem:[#allocation8 + $0x1e0] ss:$16 sps:$4 sm:$0xff]   ;;  %v4385_v47 = vld [vmem:[#allocation8 + $0x1e8] ss:$16 sps:$4 sm:$0xff]   ;;  %v182_v50 = vlaneseq }
  0xd6   :  { %3737 = vmatmul.mubr.msk.bf16.vlgmr.msra.gmra.mrb[8].mxu1 %vm282_vm1, %v5296_v24  ;;  %2179 = vmatprep.subr.bf16.mxu0 %v4300_v51  ;;  %v4349_v24 = vld [vmem:[#allocation8 + $0x128] ss:$16 sps:$4 sm:$0xff]   ;;  %v4390_v48 = vld [vmem:[#allocation8 + $0x204] ss:$16 sps:$4 sm:$0xff]   ;;  %v4393_v49 = vld [vmem:[#allocation8 + $0x20c] ss:$16 sps:$4 sm:$0xff]  }
  0xd7   :  { %2350 = vmatpush1.bf16.msra.mxu1 %v4295_v52  ;;  %v5324_v51 = vshrl.u32 %v182_v50, 7  ;;  %v4400_v50 = vld [vmem:[#allocation8 + $0x240] ss:$16 sps:$4 sm:$0xff]  }
  0xd8   :  { %2351 = vmatprep.subr.bf16.mxu1 %v4303_v53  ;;  %v5329_v53 = vld [vmem:[#allocation7] sm:$0xff] }
  0xd9   :  { %2180 = vmatpush1.bf16.msra.mxu0 %v4298_v54  ;;  %v5327_v52 = vsub.s32 0, %v5324_v51  ;;  %v5332_v54 = vsub.s32 1, %v5324_v51 }
  0xda   :  { %2181 = vmatprep.subr.bf16.mxu0 %v4306_v55  ;;  %v5335_v55 = vsub.s32 2, %v5324_v51 }
  0xdb   :  { %2352 = vmatpush1.bf16.msra.mxu1 %v4301_v56  ;;  %v196_v56 = vsub.s32 3, %v5324_v51 }
  0xdc   :  { %2353 = vmatprep.subr.bf16.mxu1 %v4309_v57  ;;  %v185_v57 = vrot.slane %v5329_v53, %v5327_v52 }
  0xdd   :  { %2182 = vmatpush1.bf16.msra.mxu0 %v4304_v58  ;;  %v189_v58 = vrot.slane %v5329_v53, %v5332_v54 }
  0xde   :  { %2183 = vmatprep.subr.bf16.mxu0 %v4312_v59  ;;  %v193_v59 = vrot.slane %v5329_v53, %v5335_v55 }
  0xdf   :  { %2354 = vmatpush1.bf16.msra.mxu1 %v4307_v60 }
  0xe0   :  { %2355 = vmatprep.subr.bf16.mxu1 %v4315_v61  ;;  %v197_v61 = vrot.slane %v5329_v53, %v196_v56 }
  0xe1   :  { %2184 = vmatpush1.bf16.msra.mxu0 %v4310_v62  ;;  %v200_v62 = vsub.s32 4, %v5324_v51 }
  0xe2   :  { %2185 = vmatprep.subr.bf16.mxu0 %v4318_v63  ;;  %v204_v63 = vsub.s32 5, %v5324_v51 }
  0xe3   :  { %2356 = vmatpush1.bf16.msra.mxu1 %v4313_v0 }
  0xe4   :  { %2357 = vmatprep.subr.bf16.mxu1 %v4321_v1 }
  0xe5   :  { %2186 = vmatpush1.bf16.msra.mxu0 %v4316_v2 }
  0xe6   :  { %2187 = vmatprep.subr.bf16.mxu0 %v4324_v3 }
  0xe7   :  { %2358 = vmatpush1.bf16.msra.mxu1 %v4319_v4 }
  0xe8   :  { %2359 = vmatprep.subr.bf16.mxu1 %v4327_v6 }
  0xe9   :  { %2188 = vmatpush1.bf16.msra.mxu0 %v4322_v5 }
  0xea   :  { %2189 = vmatprep.subr.bf16.mxu0 %v4330_v8 }
  0xeb   :  { %2360 = vmatpush1.bf16.msra.mxu1 %v4325_v7 }
  0xec   :  { %2361 = vmatprep.subr.bf16.mxu1 %v4333_v9 }
  0xed   :  { %2190 = vmatpush1.bf16.msra.mxu0 %v4328_v10 }
  0xee   :  { %2191 = vmatprep.subr.bf16.mxu0 %v4336_v11 }
  0xef   :  { %2362 = vmatpush1.bf16.msra.mxu1 %v4331_v12  ;;  %v201_v12 = vrot.slane %v5329_v53, %v200_v62  ;;  %v4409_v62 = vld [vmem:[#allocation8 + $0x268] ss:$16 sps:$4 sm:$0xff]  }
  0xf0   :  { %2363 = vmatprep.subr.bf16.mxu1 %v4339_v13  ;;  %v205_v13 = vrot.slane %v5329_v53, %v204_v63  ;;  %v4414_v63 = vld [vmem:[#allocation8 + $0x284] ss:$16 sps:$4 sm:$0xff]  }
  0xf1   :  { %2192 = vmatpush1.bf16.msra.mxu0 %v4334_v14 }
  0xf2   :  { %2193 = vmatprep.subr.bf16.mxu0 %v4342_v15 }
  0xf3   :  { %2364 = vmatpush1.bf16.msra.mxu1 %v4337_v16 }
  0xf4   :  { %2365 = vmatprep.subr.bf16.mxu1 %v4345_v17 }
  0xf5   :  { %2194 = vmatpush1.bf16.msra.mxu0 %v4340_v18 }
  0xf6   :  { %2195 = vmatprep.subr.bf16.mxu0 %v4348_v19 }
  0xf7   :  { %2366 = vmatpush1.bf16.msra.mxu1 %v4343_v20 }
  0xf8   :  { %2367 = vmatprep.subr.bf16.mxu1 %v4351_v21 }
  0xf9   :  { %2196 = vmatpush1.bf16.msra.mxu0 %v4346_v22 }
  0xfa   :  { %2197 = vmatprep.subr.bf16.mxu0 %v4354_v23 }
  0xfb   :  { %2368 = vmatpush1.bf16.msra.mxu1 %v4349_v24 }
  0xfc   :  { %2369 = vmatprep.subr.bf16.mxu1 %v4357_v25 }
  0xfd   :  { %2198 = vmatpush1.bf16.msra.mxu0 %v4352_v26  ;;  %v4388_v26 = vld [vmem:[#allocation8 + $0x200] ss:$16 sps:$4 sm:$0xff]  }
  0xfe   :  { %2199 = vmatprep.subr.bf16.mxu0 %v4360_v27  ;;  %v4391_v27 = vld [vmem:[#allocation8 + $0x208] ss:$16 sps:$4 sm:$0xff]  }
  0xff   :  { %2370 = vmatpush1.bf16.msra.mxu1 %v4355_v28 }
 0x100   :  { %2371 = vmatprep.subr.bf16.mxu1 %v4363_v29 }
 0x101   :  { %2200 = vmatpush1.bf16.msra.mxu0 %v4358_v30  ;;  %v4396_v30 = vld [vmem:[#allocation8 + $0x224] ss:$16 sps:$4 sm:$0xff]  }
 0x102   :  { %2201 = vmatprep.subr.bf16.mxu0 %v4366_v31  ;;  %v4399_v31 = vld [vmem:[#allocation8 + $0x22c] ss:$16 sps:$4 sm:$0xff]  }
 0x103   :  { %2372 = vmatpush1.bf16.msra.mxu1 %v4361_v32 }
 0x104   :  { %2373 = vmatprep.subr.bf16.mxu1 %v4369_v33 }
 0x105   :  { %2202 = vmatpush1.bf16.msra.mxu0 %v4364_v34 }
 0x106   :  { %2203 = vmatprep.subr.bf16.mxu0 %v4372_v35 }
 0x107   :  { %2374 = vmatpush1.bf16.msra.mxu1 %v4367_v36 }
 0x108   :  { %2375 = vmatprep.subr.bf16.mxu1 %v4375_v37 }
 0x109   :  { %2204 = vmatpush1.bf16.msra.mxu0 %v4370_v38 }
 0x10a   :  { %2205 = vmatprep.subr.bf16.mxu0 %v4378_v40 }
 0x10b   :  { %2376 = vmatpush1.bf16.msra.mxu1 %v4373_v39 }
 0x10c   :  { %2377 = vmatprep.subr.bf16.mxu1 %v4381_v41  ;;  %v4394_v41 = vld [vmem:[#allocation8 + $0x220] ss:$16 sps:$4 sm:$0xff]  }
 0x10d   :  { %2206 = vmatpush1.bf16.msra.mxu0 %v4376_v42  ;;  %v4397_v42 = vld [vmem:[#allocation8 + $0x228] ss:$16 sps:$4 sm:$0xff]  }
 0x10e   :  { %2207 = vmatprep.subr.bf16.mxu0 %v4384_v44 }
 0x10f   :  { %2378 = vmatpush1.bf16.msra.mxu1 %v4379_v43 }
 0x110   :  { %2379 = vmatprep.subr.bf16.mxu1 %v4387_v45  ;;  %v4402_v45 = vld [vmem:[#allocation8 + $0x244] ss:$16 sps:$4 sm:$0xff]  }
 0x111   :  { %2208 = vmatpush1.bf16.msra.mxu0 %v4382_v46  ;;  %v4405_v46 = vld [vmem:[#allocation8 + $0x24c] ss:$16 sps:$4 sm:$0xff]  }
 0x112   :  { %2220 = vmatprep.subr.bf16.mxu0 %v4390_v48 }
 0x113   :  { %2380 = vmatpush1.bf16.msra.mxu1 %v4385_v47 }
 0x114   :  { %2392 = vmatprep.subr.bf16.mxu1 %v4393_v49 }
 0x197   :  { %v345_v60 = vpop.f32.mrb[0].mxu0  ;;  %v388_v4 = vpop.f32.mrb[0].mxu1 }
 0x198   :  { %v346_v0 = vadd.f32 %v345_v60, %v185_v57  ;;  %v347_v1 = vpop.f32.mrb[1].mxu0  ;;  %v389_v7 = vadd.f32 %v388_v4, %v193_v59  ;;  %v390_v8 = vpop.f32.mrb[1].mxu1  ;;  %v4411_v60 = vld [vmem:[#allocation8 + $0x26c] ss:$16 sps:$4 sm:$0xff]  }
 0x199   :  { %v348_v2 = vadd.f32 %v347_v1, %v189_v58  ;;  %v349_v3 = vpop.f32.mrb[2].mxu0  ;;  %v391_v10 = vadd.f32 %v390_v8, %v197_v61  ;;  %v392_v11 = vpop.f32.mrb[2].mxu1  ;;  %v4412_v1 = vld [vmem:[#allocation8 + $0x280] ss:$16 sps:$4 sm:$0xff]   ;;  %v4423_v4 = vld [vmem:[#allocation8 + $0x2ac] ss:$16 sps:$4 sm:$0xff]  }
 0x19a   :  { %v350_v5 = vadd.f32 %v349_v3, %v185_v57  ;;  %v351_v6 = vpop.f32.mrb[3].mxu0  ;;  %v483_v14 = vmax.f32 %v346_v0, 0.0  ;;  %v485_v16 = vmax.f32 %v389_v7, 0.0  ;;  %v393_v17 = vadd.f32 %v392_v11, %v193_v59  ;;  %v394_v18 = vpop.f32.mrb[3].mxu1  ;;  %v4403_v57 = vld [vmem:[#allocation8 + $0x248] ss:$16 sps:$4 sm:$0xff]  }
 0x19b   :  { %v352_v9 = vadd.f32 %v351_v6, %v189_v58  ;;  %v484_v19 = vmax.f32 %v348_v2, 0.0  ;;  %v486_v21 = vmax.f32 %v391_v10, 0.0  ;;  %v395_v22 = vadd.f32 %v394_v18, %v197_v61  ;;  %v4408_v59 = vld [vmem:[#allocation8 + $0x264] ss:$16 sps:$4 sm:$0xff]   ;;  %v4406_v61 = vld [vmem:[#allocation8 + $0x260] ss:$16 sps:$4 sm:$0xff]  }
 0x19c   :  { %v491_v15 = vmax.f32 %v350_v5, 0.0  ;;  %v493_v24 = vmax.f32 %v393_v17, 0.0  ;;  %v4417_v0 = vld [vmem:[#allocation8 + $0x28c] ss:$16 sps:$4 sm:$0xff]   ;;  %v4415_v2 = vld [vmem:[#allocation8 + $0x288] ss:$16 sps:$4 sm:$0xff]  }
 0x19d   :  { %v492_v20 = vmax.f32 %v352_v9, 0.0  ;;  %v494_v28 = vmax.f32 %v395_v22, 0.0  ;;  %v4420_v3 = vld [vmem:[#allocation8 + $0x2a4] ss:$16 sps:$4 sm:$0xff]   ;;  %v4418_v5 = vld [vmem:[#allocation8 + $0x2a0] ss:$16 sps:$4 sm:$0xff]  }
 0x19e   :  { %v499_v23 = vpack.c.bf16 %v491_v15, %v483_v14  ;;  %v5351_v32 = vpack.c.bf16 %v493_v24, %v485_v16  ;;  %v4421_v6 = vld [vmem:[#allocation8 + $0x2a8] ss:$16 sps:$4 sm:$0xff]   ;;  %v4426_v7 = vld [vmem:[#allocation8 + $0x2c4] ss:$16 sps:$4 sm:$0xff]   ;;  %v4429_v8 = vld [vmem:[#allocation8 + $0x2cc] ss:$16 sps:$4 sm:$0xff]  }
 0x19f   :  { %v500_v25 = vpack.c.bf16 %v492_v20, %v484_v19  ;;  %v431_v29 = vpop.f32.mrb[4].mxu0  ;;  %v502_v35 = vpack.c.bf16 %v494_v28, %v486_v21  ;;  %v4424_v9 = vld [vmem:[#allocation8 + $0x2c0] ss:$16 sps:$4 sm:$0xff]   ;;  %v4427_v10 = vld [vmem:[#allocation8 + $0x2c8] ss:$16 sps:$4 sm:$0xff]  }
 0x1a0   :  { %v432_v33 = vadd.f32 %v431_v29, %v201_v12  ;;  %v433_v34 = vpop.f32.mrb[5].mxu0  ;;  %v4432_v11 = vld [vmem:[#allocation8 + $0x2e4] ss:$16 sps:$4 sm:$0xff]   ;;  %v4433_v14 = vld [vmem:[#allocation8 + $0x2e8] ss:$16 sps:$4 sm:$0xff]  }
 0x1a1   :  { %2209 = vmatprep.mubr.bf16.mxu0 %v500_v25  ;;  %2381 = vmatprep.mubr.bf16.mxu1 %v500_v25  ;;  %v434_v36 = vadd.f32 %v433_v34, %v205_v13  ;;  %v435_v37 = vpop.f32.mrb[6].mxu0  ;;  %v4438_v15 = vld [vmem:[#allocation8 + $0x304] ss:$16 sps:$4 sm:$0xff]   ;;  %v4441_v16 = vld [vmem:[#allocation8 + $0x30c] ss:$16 sps:$4 sm:$0xff]  }
 0x1a2   :  { %2210 = vmatmul.mubr.bf16.vlgmr.msra.gmra.mrb[8].mxu0 %v499_v23  ;;  %2382 = vmatmul.mubr.bf16.vlgmr.msra.gmra.mrb[8].mxu1 %v499_v23  ;;  %v487_v38 = vmax.f32 %v432_v33, 0.0  ;;  %v436_v39 = vadd.f32 %v435_v37, %v201_v12  ;;  %v437_v40 = vpop.f32.mrb[7].mxu0  ;;  %v4435_v12 = vld [vmem:[#allocation8 + $0x2ec] ss:$16 sps:$4 sm:$0xff]   ;;  %v4436_v17 = vld [vmem:[#allocation8 + $0x300] ss:$16 sps:$4 sm:$0xff]  }
 0x1a3   :  { %2221 = vmatpush1.bf16.msra.mxu0 %v4388_v26  ;;  %2393 = vmatpush1.bf16.msra.mxu1 %v4391_v27  ;;  %v488_v43 = vmax.f32 %v434_v36, 0.0  ;;  %v438_v44 = vadd.f32 %v437_v40, %v205_v13  ;;  %v4430_v13 = vld [vmem:[#allocation8 + $0x2e0] ss:$16 sps:$4 sm:$0xff]   ;;  %v4439_v18 = vld [vmem:[#allocation8 + $0x308] ss:$16 sps:$4 sm:$0xff]   ;;  %v208_v40 = vsub.s32 6, %v5324_v51 }
 0x1a4   :  { %2222 = vmatprep.subr.bf16.mxu0 %v4396_v30  ;;  %2394 = vmatprep.subr.bf16.mxu1 %v4399_v31  ;;  %v495_v47 = vmax.f32 %v436_v39, 0.0  ;;  %v4444_v19 = vld [vmem:[#allocation8 + $0x324] ss:$16 sps:$4 sm:$0xff]   ;;  %v4447_v20 = vld [vmem:[#allocation8 + $0x32c] ss:$16 sps:$4 sm:$0xff]  }
 0x1a5   :  { %2252 = vmatprep.mubr.bf16.mxu0 %v502_v35  ;;  %2424 = vmatprep.mubr.bf16.mxu1 %v502_v35  ;;  %v496_v48 = vmax.f32 %v438_v44, 0.0  ;;  %v4442_v21 = vld [vmem:[#allocation8 + $0x320] ss:$16 sps:$4 sm:$0xff]   ;;  %v4445_v22 = vld [vmem:[#allocation8 + $0x328] ss:$16 sps:$4 sm:$0xff]  }
 0x1a6   :  { %v5353_v49 = vpack.c.bf16 %v495_v47, %v487_v38  ;;  %v4450_v23 = vld [vmem:[#allocation8 + $0x344] ss:$16 sps:$4 sm:$0xff]   ;;  %v4453_v24 = vld [vmem:[#allocation8 + $0x34c] ss:$16 sps:$4 sm:$0xff]   ;;  %v4448_v25 = vld [vmem:[#allocation8 + $0x340] ss:$16 sps:$4 sm:$0xff]  }
 0x1a7   :  { %2223 = vmatpush1.bf16.msra.mxu0 %v4394_v41  ;;  %2395 = vmatpush1.bf16.msra.mxu1 %v4397_v42  ;;  %v5355_v58 = vpack.c.bf16 %v496_v48, %v488_v43  ;;  %v4451_v26 = vld [vmem:[#allocation8 + $0x348] ss:$16 sps:$4 sm:$0xff]   ;;  %v4456_v27 = vld [vmem:[#allocation8 + $0x364] ss:$16 sps:$4 sm:$0xff]   ;;  %v4459_v28 = vld [vmem:[#allocation8 + $0x36c] ss:$16 sps:$4 sm:$0xff]  }
 0x1a8   :  { %2224 = vmatprep.subr.bf16.mxu0 %v4402_v45  ;;  %2396 = vmatprep.subr.bf16.mxu1 %v4405_v46  ;;  %v4454_v29 = vld [vmem:[#allocation8 + $0x360] ss:$16 sps:$4 sm:$0xff]   ;;  %v4457_v30 = vld [vmem:[#allocation8 + $0x368] ss:$16 sps:$4 sm:$0xff]   ;;  %v4462_v31 = vld [vmem:[#allocation8 + $0x384] ss:$16 sps:$4 sm:$0xff]   ;;  %v209_v46 = vrot.slane %v5329_v53, %v208_v40 }
 0x1a9   :  { %v4465_v33 = vld [vmem:[#allocation8 + $0x38c] ss:$16 sps:$4 sm:$0xff]   ;;  %v4460_v34 = vld [vmem:[#allocation8 + $0x380] ss:$16 sps:$4 sm:$0xff]   ;;  %v4463_v35 = vld [vmem:[#allocation8 + $0x388] ss:$16 sps:$4 sm:$0xff]  }
 0x1aa   :  { %v4468_v36 = vld [vmem:[#allocation8 + $0x3a4] ss:$16 sps:$4 sm:$0xff]   ;;  %v4471_v37 = vld [vmem:[#allocation8 + $0x3ac] ss:$16 sps:$4 sm:$0xff]   ;;  %v4466_v38 = vld [vmem:[#allocation8 + $0x3a0] ss:$16 sps:$4 sm:$0xff]  }
 0x1ab   :  { %2225 = vmatpush1.bf16.msra.mxu0 %v4400_v50  ;;  %2397 = vmatpush1.bf16.msra.mxu1 %v4403_v57  ;;  %v4469_v39 = vld [vmem:[#allocation8 + $0x3a8] ss:$16 sps:$4 sm:$0xff]   ;;  %v474_v41 = vpop.f32.mrb[4].mxu1  ;;  %v212_v42 = vsub.s32 7, %v5324_v51  ;;  %v4474_v43 = vld [vmem:[#allocation8 + $0x3c4] ss:$16 sps:$4 sm:$0xff]  }
 0x1ac   :  { %2226 = vmatprep.subr.bf16.mxu0 %v4408_v59  ;;  %2398 = vmatprep.subr.bf16.mxu1 %v4411_v60  ;;  %v4477_v44 = vld [vmem:[#allocation8 + $0x3cc] ss:$16 sps:$4 sm:$0xff]   ;;  %v476_v45 = vpop.f32.mrb[5].mxu1  ;;  %v4472_v57 = vld [vmem:[#allocation8 + $0x3c0] ss:$16 sps:$4 sm:$0xff]   ;;  %v475_v60 = vadd.f32 %v474_v41, %v209_v46 }
 0x1ad   :  { %v213_v47 = vrot.slane %v5329_v53, %v212_v42  ;;  %v478_v48 = vpop.f32.mrb[6].mxu1  ;;  %v4475_v59 = vld [vmem:[#allocation8 + $0x3c8] ss:$16 sps:$4 sm:$0xff]   ;;  %v4478_v53 = vld [vmem:[#allocation8 + $0x3e0] ss:$16 sps:$4 sm:$0xff]  }
 0x1ae   :  { %v480_v50 = vpop.f32.mrb[7].mxu1  ;;  %v4534_v40 = vld [vmem:[#allocation8 + $0x504] ss:$16 sps:$4 sm:$0xff]   ;;  %v4537_v41 = vld [vmem:[#allocation8 + $0x50c] ss:$16 sps:$4 sm:$0xff]  }
 0x1af   :  { %2227 = vmatpush1.bf16.msra.mxu0 %v4406_v61  ;;  %2399 = vmatpush1.bf16.msra.mxu1 %v4409_v62  ;;  %v477_v61 = vadd.f32 %v476_v45, %v213_v47  ;;  %v479_v62 = vadd.f32 %v478_v48, %v209_v46  ;;  %v4532_v42 = vld [vmem:[#allocation8 + $0x500] ss:$16 sps:$4 sm:$0xff]   ;;  %v4543_v45 = vld [vmem:[#allocation8 + $0x52c] ss:$16 sps:$4 sm:$0xff]   ;;  %v4546_v48 = vld [vmem:[#allocation8 + $0x544] ss:$16 sps:$4 sm:$0xff]  }
 0x1b0   :  { %2228 = vmatprep.subr.bf16.mxu0 %v4414_v63  ;;  %2400 = vmatprep.subr.bf16.mxu1 %v4417_v0  ;;  %v4480_v63 = vld [vmem:[#allocation8 + $0x3e4] ss:$16 sps:$4 sm:$0xff]   ;;  %v4483_v0 = vld [vmem:[#allocation8 + $0x3ec] ss:$16 sps:$4 sm:$0xff]   ;;  %v4538_v46 = vld [vmem:[#allocation8 + $0x520] ss:$16 sps:$4 sm:$0xff]  }
 0x1b3   :  { %2229 = vmatpush1.bf16.msra.mxu0 %v4412_v1  ;;  %2401 = vmatpush1.bf16.msra.mxu1 %v4415_v2  ;;  %v481_v1 = vadd.f32 %v480_v50, %v213_v47  ;;  %v489_v2 = vmax.f32 %v475_v60, 0.0  ;;  %v4541_v47 = vld [vmem:[#allocation8 + $0x528] ss:$16 sps:$4 sm:$0xff]   ;;  %v4549_v50 = vld [vmem:[#allocation8 + $0x54c] ss:$16 sps:$4 sm:$0xff]  }
 0x1b4   :  { %2230 = vmatprep.subr.bf16.mxu0 %v4420_v3  ;;  %2402 = vmatprep.subr.bf16.mxu1 %v4423_v4  ;;  %v490_v3 = vmax.f32 %v477_v61, 0.0  ;;  %v497_v4 = vmax.f32 %v479_v62, 0.0  ;;  %v4552_v60 = vld [vmem:[#allocation8 + $0x564] ss:$16 sps:$4 sm:$0xff]   ;;  %v4555_v61 = vld [vmem:[#allocation8 + $0x56c] ss:$16 sps:$4 sm:$0xff]  }
 0x1b5   :  { %v4550_v62 = vld [vmem:[#allocation8 + $0x560] ss:$16 sps:$4 sm:$0xff]  }
 0x1b7   :  { %2231 = vmatpush1.bf16.msra.mxu0 %v4418_v5  ;;  %2403 = vmatpush1.bf16.msra.mxu1 %v4421_v6  ;;  %v498_v5 = vmax.f32 %v481_v1, 0.0  ;;  %v4481_v6 = vld [vmem:[#allocation8 + $0x3e8] ss:$16 sps:$4 sm:$0xff]   ;;  %v4561_v1 = vld [vmem:[#allocation8 + $0x58c] ss:$16 sps:$4 sm:$0xff]  }
 0x1b8   :  { %2232 = vmatprep.subr.bf16.mxu0 %v4426_v7  ;;  %2404 = vmatprep.subr.bf16.mxu1 %v4429_v8  ;;  %v5361_v7 = vpack.c.bf16 %v497_v4, %v489_v2  ;;  %v4486_v8 = vld [vmem:[#allocation8 + $0x404] ss:$16 sps:$4 sm:$0xff]   ;;  %v4556_v2 = vld [vmem:[#allocation8 + $0x580] ss:$16 sps:$4 sm:$0xff]  }
 0x1b9   :  { %v4564_v4 = vld [vmem:[#allocation8 + $0x5a4] ss:$16 sps:$4 sm:$0xff]  }
 0x1bb   :  { %2233 = vmatpush1.bf16.msra.mxu0 %v4424_v9  ;;  %2405 = vmatpush1.bf16.msra.mxu1 %v4427_v10  ;;  %v4489_v9 = vld [vmem:[#allocation8 + $0x40c] ss:$16 sps:$4 sm:$0xff]   ;;  %v5363_v10 = vpack.c.bf16 %v498_v5, %v490_v3  ;;  %v4559_v3 = vld [vmem:[#allocation8 + $0x588] ss:$16 sps:$4 sm:$0xff]  }
 0x1bc   :  { %2234 = vmatprep.subr.bf16.mxu0 %v4432_v11  ;;  %2406 = vmatprep.subr.bf16.mxu1 %v4435_v12  ;;  %v4484_v11 = vld [vmem:[#allocation8 + $0x400] ss:$16 sps:$4 sm:$0xff]   ;;  %v4487_v12 = vld [vmem:[#allocation8 + $0x408] ss:$16 sps:$4 sm:$0xff]   ;;  %v4567_v5 = vld [vmem:[#allocation8 + $0x5ac] ss:$16 sps:$4 sm:$0xff]  }
 0x1bf   :  { %2235 = vmatpush1.bf16.msra.mxu0 %v4430_v13  ;;  %2407 = vmatpush1.bf16.msra.mxu1 %v4433_v14  ;;  %v4492_v13 = vld [vmem:[#allocation8 + $0x424] ss:$16 sps:$4 sm:$0xff]   ;;  %v4495_v14 = vld [vmem:[#allocation8 + $0x42c] ss:$16 sps:$4 sm:$0xff]  }
 0x1c0   :  { %2236 = vmatprep.subr.bf16.mxu0 %v4438_v15  ;;  %2408 = vmatprep.subr.bf16.mxu1 %v4441_v16  ;;  %v4490_v15 = vld [vmem:[#allocation8 + $0x420] ss:$16 sps:$4 sm:$0xff]   ;;  %v4493_v16 = vld [vmem:[#allocation8 + $0x428] ss:$16 sps:$4 sm:$0xff]  }
 0x1c3   :  { %2237 = vmatpush1.bf16.msra.mxu0 %v4436_v17  ;;  %2409 = vmatpush1.bf16.msra.mxu1 %v4439_v18  ;;  %v4498_v17 = vld [vmem:[#allocation8 + $0x444] ss:$16 sps:$4 sm:$0xff]   ;;  %v4501_v18 = vld [vmem:[#allocation8 + $0x44c] ss:$16 sps:$4 sm:$0xff]  }
 0x1c4   :  { %2238 = vmatprep.subr.bf16.mxu0 %v4444_v19  ;;  %2410 = vmatprep.subr.bf16.mxu1 %v4447_v20  ;;  %v4496_v19 = vld [vmem:[#allocation8 + $0x440] ss:$16 sps:$4 sm:$0xff]   ;;  %v4499_v20 = vld [vmem:[#allocation8 + $0x448] ss:$16 sps:$4 sm:$0xff]  }
 0x1c7   :  { %2239 = vmatpush1.bf16.msra.mxu0 %v4442_v21  ;;  %2411 = vmatpush1.bf16.msra.mxu1 %v4445_v22  ;;  %v4504_v21 = vld [vmem:[#allocation8 + $0x464] ss:$16 sps:$4 sm:$0xff]   ;;  %v4502_v22 = vld [vmem:[#allocation8 + $0x460] ss:$16 sps:$4 sm:$0xff]  }
 0x1c8   :  { %2240 = vmatprep.subr.bf16.mxu0 %v4450_v23  ;;  %2412 = vmatprep.subr.bf16.mxu1 %v4453_v24  ;;  %v4505_v23 = vld [vmem:[#allocation8 + $0x468] ss:$16 sps:$4 sm:$0xff]   ;;  %v4510_v24 = vld [vmem:[#allocation8 + $0x484] ss:$16 sps:$4 sm:$0xff]  }
 0x1cb   :  { %2241 = vmatpush1.bf16.msra.mxu0 %v4448_v25  ;;  %2413 = vmatpush1.bf16.msra.mxu1 %v4451_v26  ;;  %v4513_v25 = vld [vmem:[#allocation8 + $0x48c] ss:$16 sps:$4 sm:$0xff]   ;;  %v4508_v26 = vld [vmem:[#allocation8 + $0x480] ss:$16 sps:$4 sm:$0xff]  }
 0x1cc   :  { %2242 = vmatprep.subr.bf16.mxu0 %v4456_v27  ;;  %2414 = vmatprep.subr.bf16.mxu1 %v4459_v28  ;;  %v4516_v27 = vld [vmem:[#allocation8 + $0x4a4] ss:$16 sps:$4 sm:$0xff]   ;;  %v4519_v28 = vld [vmem:[#allocation8 + $0x4ac] ss:$16 sps:$4 sm:$0xff]  }
 0x1cf   :  { %2243 = vmatpush1.bf16.msra.mxu0 %v4454_v29  ;;  %2415 = vmatpush1.bf16.msra.mxu1 %v4457_v30  ;;  %v4514_v29 = vld [vmem:[#allocation8 + $0x4a0] ss:$16 sps:$4 sm:$0xff]   ;;  %v4517_v30 = vld [vmem:[#allocation8 + $0x4a8] ss:$16 sps:$4 sm:$0xff]  }
 0x1d0   :  { %2244 = vmatprep.subr.bf16.mxu0 %v4462_v31  ;;  %2416 = vmatprep.subr.bf16.mxu1 %v4465_v33  ;;  %v4522_v31 = vld [vmem:[#allocation8 + $0x4c4] ss:$16 sps:$4 sm:$0xff]   ;;  %v4525_v33 = vld [vmem:[#allocation8 + $0x4cc] ss:$16 sps:$4 sm:$0xff]  }
 0x1d3   :  { %2245 = vmatpush1.bf16.msra.mxu0 %v4460_v34  ;;  %2417 = vmatpush1.bf16.msra.mxu1 %v4463_v35  ;;  %v4520_v34 = vld [vmem:[#allocation8 + $0x4c0] ss:$16 sps:$4 sm:$0xff]   ;;  %v4523_v35 = vld [vmem:[#allocation8 + $0x4c8] ss:$16 sps:$4 sm:$0xff]  }
 0x1d4   :  { %2246 = vmatprep.subr.bf16.mxu0 %v4468_v36  ;;  %2418 = vmatprep.subr.bf16.mxu1 %v4471_v37  ;;  %v4528_v36 = vld [vmem:[#allocation8 + $0x4e4] ss:$16 sps:$4 sm:$0xff]   ;;  %v4531_v37 = vld [vmem:[#allocation8 + $0x4ec] ss:$16 sps:$4 sm:$0xff]  }
 0x1d7   :  { %2247 = vmatpush1.bf16.msra.mxu0 %v4466_v38  ;;  %2419 = vmatpush1.bf16.msra.mxu1 %v4469_v39  ;;  %v4526_v38 = vld [vmem:[#allocation8 + $0x4e0] ss:$16 sps:$4 sm:$0xff]   ;;  %v4529_v39 = vld [vmem:[#allocation8 + $0x4e8] ss:$16 sps:$4 sm:$0xff]  }
 0x1d8   :  { %2248 = vmatprep.subr.bf16.mxu0 %v4474_v43  ;;  %2420 = vmatprep.subr.bf16.mxu1 %v4477_v44  ;;  %v4535_v43 = vld [vmem:[#allocation8 + $0x508] ss:$16 sps:$4 sm:$0xff]   ;;  %v4540_v44 = vld [vmem:[#allocation8 + $0x524] ss:$16 sps:$4 sm:$0xff]  }
 0x1db   :  { %2249 = vmatpush1.bf16.msra.mxu0 %v4472_v57  ;;  %2421 = vmatpush1.bf16.msra.mxu1 %v4475_v59  ;;  %v4544_v57 = vld [vmem:[#allocation8 + $0x540] ss:$16 sps:$4 sm:$0xff]   ;;  %v4547_v59 = vld [vmem:[#allocation8 + $0x548] ss:$16 sps:$4 sm:$0xff]  }
 0x1dc   :  { %2250 = vmatprep.subr.bf16.mxu0 %v4480_v63  ;;  %2422 = vmatprep.subr.bf16.mxu1 %v4483_v0  ;;  %v4553_v63 = vld [vmem:[#allocation8 + $0x568] ss:$16 sps:$4 sm:$0xff]   ;;  %v4558_v0 = vld [vmem:[#allocation8 + $0x584] ss:$16 sps:$4 sm:$0xff]  }
 0x1df   :  { %2251 = vmatpush1.bf16.msra.mxu0 %v4478_v53  ;;  %2423 = vmatpush1.bf16.msra.mxu1 %v4481_v6  ;;  %v4562_v53 = vld [vmem:[#allocation8 + $0x5a0] ss:$16 sps:$4 sm:$0xff]   ;;  %v4565_v6 = vld [vmem:[#allocation8 + $0x5a8] ss:$16 sps:$4 sm:$0xff]  }
 0x1e0   :  { %2263 = vmatprep.subr.bf16.mxu0 %v4486_v8  ;;  %2435 = vmatprep.subr.bf16.mxu1 %v4489_v9  ;;  %v4570_v8 = vld [vmem:[#allocation8 + $0x5c4] ss:$16 sps:$4 sm:$0xff]   ;;  %v4573_v9 = vld [vmem:[#allocation8 + $0x5cc] ss:$16 sps:$4 sm:$0xff]  }
 0x1e2   :  { %2253 = vmatmul.mubr.bf16.vlgmr.msra.gmra.mrb[8].mxu0 %v5351_v32  ;;  %2425 = vmatmul.mubr.bf16.vlgmr.msra.gmra.mrb[8].mxu1 %v5351_v32  ;;  %v4507_v32 = vld [vmem:[#allocation8 + $0x46c] ss:$16 sps:$4 sm:$0xff]  }
 0x1e3   :  { %2264 = vmatpush1.bf16.msra.mxu0 %v4484_v11  ;;  %2436 = vmatpush1.bf16.msra.mxu1 %v4487_v12  ;;  %v4568_v11 = vld [vmem:[#allocation8 + $0x5c0] ss:$16 sps:$4 sm:$0xff]   ;;  %v4571_v12 = vld [vmem:[#allocation8 + $0x5c8] ss:$16 sps:$4 sm:$0xff]  }
 0x1e4   :  { %2265 = vmatprep.subr.bf16.mxu0 %v4492_v13  ;;  %2437 = vmatprep.subr.bf16.mxu1 %v4495_v14  ;;  %v4576_v13 = vld [vmem:[#allocation8 + $0x5e4] ss:$16 sps:$4 sm:$0xff]   ;;  %v4579_v14 = vld [vmem:[#allocation8 + $0x5ec] ss:$16 sps:$4 sm:$0xff]  }
 0x1e5   :  { %2295 = vmatprep.mubr.bf16.mxu0 %v5355_v58  ;;  %2467 = vmatprep.mubr.bf16.mxu1 %v5355_v58  ;;  %v4511_v58 = vld [vmem:[#allocation8 + $0x488] ss:$16 sps:$4 sm:$0xff]  }
 0x1e7   :  { %2266 = vmatpush1.bf16.msra.mxu0 %v4490_v15  ;;  %2438 = vmatpush1.bf16.msra.mxu1 %v4493_v16  ;;  %v4574_v15 = vld [vmem:[#allocation8 + $0x5e0] ss:$16 sps:$4 sm:$0xff]   ;;  %v4577_v16 = vld [vmem:[#allocation8 + $0x5e8] ss:$16 sps:$4 sm:$0xff]  }
 0x1e8   :  { %2267 = vmatprep.subr.bf16.mxu0 %v4498_v17  ;;  %2439 = vmatprep.subr.bf16.mxu1 %v4501_v18  ;;  %v4582_v17 = vld [vmem:[#allocation8 + $0x604] ss:$16 sps:$4 sm:$0xff]   ;;  %v4585_v18 = vld [vmem:[#allocation8 + $0x60c] ss:$16 sps:$4 sm:$0xff]  }
 0x1eb   :  { %2268 = vmatpush1.bf16.msra.mxu0 %v4496_v19  ;;  %2440 = vmatpush1.bf16.msra.mxu1 %v4499_v20  ;;  %v4580_v19 = vld [vmem:[#allocation8 + $0x600] ss:$16 sps:$4 sm:$0xff]   ;;  %v4583_v20 = vld [vmem:[#allocation8 + $0x608] ss:$16 sps:$4 sm:$0xff]  }
 0x1ec   :  { %2269 = vmatprep.subr.bf16.mxu0 %v4504_v21  ;;  %2441 = vmatprep.subr.bf16.mxu1 %v4507_v32  ;;  %v4588_v21 = vld [vmem:[#allocation8 + $0x624] ss:$16 sps:$4 sm:$0xff]   ;;  %v4591_v32 = vld [vmem:[#allocation8 + $0x62c] ss:$16 sps:$4 sm:$0xff]  }
 0x1ef   :  { %2270 = vmatpush1.bf16.msra.mxu0 %v4502_v22  ;;  %2442 = vmatpush1.bf16.msra.mxu1 %v4505_v23  ;;  %v4586_v22 = vld [vmem:[#allocation8 + $0x620] ss:$16 sps:$4 sm:$0xff]   ;;  %v4589_v23 = vld [vmem:[#allocation8 + $0x628] ss:$16 sps:$4 sm:$0xff]  }
 0x1f0   :  { %2271 = vmatprep.subr.bf16.mxu0 %v4510_v24  ;;  %2443 = vmatprep.subr.bf16.mxu1 %v4513_v25  ;;  %v4594_v24 = vld [vmem:[#allocation8 + $0x644] ss:$16 sps:$4 sm:$0xff]   ;;  %v4597_v25 = vld [vmem:[#allocation8 + $0x64c] ss:$16 sps:$4 sm:$0xff]  }
 0x1f3   :  { %2272 = vmatpush1.bf16.msra.mxu0 %v4508_v26  ;;  %2444 = vmatpush1.bf16.msra.mxu1 %v4511_v58  ;;  %v4592_v26 = vld [vmem:[#allocation8 + $0x640] ss:$16 sps:$4 sm:$0xff]   ;;  %v4595_v58 = vld [vmem:[#allocation8 + $0x648] ss:$16 sps:$4 sm:$0xff]  }
 0x1f4   :  { %2273 = vmatprep.subr.bf16.mxu0 %v4516_v27  ;;  %2445 = vmatprep.subr.bf16.mxu1 %v4519_v28  ;;  %v4600_v27 = vld [vmem:[#allocation8 + $0x664] ss:$16 sps:$4 sm:$0xff]   ;;  %v4598_v28 = vld [vmem:[#allocation8 + $0x660] ss:$16 sps:$4 sm:$0xff]  }
 0x1f7   :  { %2274 = vmatpush1.bf16.msra.mxu0 %v4514_v29  ;;  %2446 = vmatpush1.bf16.msra.mxu1 %v4517_v30  ;;  %v4601_v29 = vld [vmem:[#allocation8 + $0x668] ss:$16 sps:$4 sm:$0xff]   ;;  %v4606_v30 = vld [vmem:[#allocation8 + $0x684] ss:$16 sps:$4 sm:$0xff]  }
 0x1f8   :  { %2275 = vmatprep.subr.bf16.mxu0 %v4522_v31  ;;  %2447 = vmatprep.subr.bf16.mxu1 %v4525_v33  ;;  %v4609_v31 = vld [vmem:[#allocation8 + $0x68c] ss:$16 sps:$4 sm:$0xff]   ;;  %v4604_v33 = vld [vmem:[#allocation8 + $0x680] ss:$16 sps:$4 sm:$0xff]  }
 0x1fb   :  { %2276 = vmatpush1.bf16.msra.mxu0 %v4520_v34  ;;  %2448 = vmatpush1.bf16.msra.mxu1 %v4523_v35  ;;  %v4612_v34 = vld [vmem:[#allocation8 + $0x6a4] ss:$16 sps:$4 sm:$0xff]   ;;  %v4615_v35 = vld [vmem:[#allocation8 + $0x6ac] ss:$16 sps:$4 sm:$0xff]  }
 0x1fc   :  { %2277 = vmatprep.subr.bf16.mxu0 %v4528_v36  ;;  %2449 = vmatprep.subr.bf16.mxu1 %v4531_v37  ;;  %v4610_v36 = vld [vmem:[#allocation8 + $0x6a0] ss:$16 sps:$4 sm:$0xff]   ;;  %v4613_v37 = vld [vmem:[#allocation8 + $0x6a8] ss:$16 sps:$4 sm:$0xff]  }
 0x1ff   :  { %2278 = vmatpush1.bf16.msra.mxu0 %v4526_v38  ;;  %2450 = vmatpush1.bf16.msra.mxu1 %v4529_v39  ;;  %v4618_v38 = vld [vmem:[#allocation8 + $0x6c4] ss:$16 sps:$4 sm:$0xff]   ;;  %v4621_v39 = vld [vmem:[#allocation8 + $0x6cc] ss:$16 sps:$4 sm:$0xff]  }
 0x200   :  { %2279 = vmatprep.subr.bf16.mxu0 %v4534_v40  ;;  %2451 = vmatprep.subr.bf16.mxu1 %v4537_v41  ;;  %v4616_v40 = vld [vmem:[#allocation8 + $0x6c0] ss:$16 sps:$4 sm:$0xff]   ;;  %v4619_v41 = vld [vmem:[#allocation8 + $0x6c8] ss:$16 sps:$4 sm:$0xff]  }
 0x203   :  { %2280 = vmatpush1.bf16.msra.mxu0 %v4532_v42  ;;  %2452 = vmatpush1.bf16.msra.mxu1 %v4535_v43  ;;  %v4624_v42 = vld [vmem:[#allocation8 + $0x6e4] ss:$16 sps:$4 sm:$0xff]   ;;  %v4627_v43 = vld [vmem:[#allocation8 + $0x6ec] ss:$16 sps:$4 sm:$0xff]  }
 0x204   :  { %2281 = vmatprep.subr.bf16.mxu0 %v4540_v44  ;;  %2453 = vmatprep.subr.bf16.mxu1 %v4543_v45  ;;  %v4622_v44 = vld [vmem:[#allocation8 + $0x6e0] ss:$16 sps:$4 sm:$0xff]   ;;  %v4625_v45 = vld [vmem:[#allocation8 + $0x6e8] ss:$16 sps:$4 sm:$0xff]  }
 0x207   :  { %2282 = vmatpush1.bf16.msra.mxu0 %v4538_v46  ;;  %2454 = vmatpush1.bf16.msra.mxu1 %v4541_v47  ;;  %v4630_v46 = vld [vmem:[#allocation8 + $0x704] ss:$16 sps:$4 sm:$0xff]   ;;  %v4633_v47 = vld [vmem:[#allocation8 + $0x70c] ss:$16 sps:$4 sm:$0xff]  }
 0x208   :  { %2283 = vmatprep.subr.bf16.mxu0 %v4546_v48  ;;  %2455 = vmatprep.subr.bf16.mxu1 %v4549_v50  ;;  %v4628_v48 = vld [vmem:[#allocation8 + $0x700] ss:$16 sps:$4 sm:$0xff]   ;;  %v4631_v50 = vld [vmem:[#allocation8 + $0x708] ss:$16 sps:$4 sm:$0xff]  }
 0x20b   :  { %2284 = vmatpush1.bf16.msra.mxu0 %v4544_v57  ;;  %2456 = vmatpush1.bf16.msra.mxu1 %v4547_v59  ;;  %v4636_v57 = vld [vmem:[#allocation8 + $0x724] ss:$16 sps:$4 sm:$0xff]   ;;  %v4639_v59 = vld [vmem:[#allocation8 + $0x72c] ss:$16 sps:$4 sm:$0xff]  }
 0x20c   :  { %2285 = vmatprep.subr.bf16.mxu0 %v4552_v60  ;;  %2457 = vmatprep.subr.bf16.mxu1 %v4555_v61  ;;  %v4634_v60 = vld [vmem:[#allocation8 + $0x720] ss:$16 sps:$4 sm:$0xff]   ;;  %v4637_v61 = vld [vmem:[#allocation8 + $0x728] ss:$16 sps:$4 sm:$0xff]  }
 0x20f   :  { %2286 = vmatpush1.bf16.msra.mxu0 %v4550_v62  ;;  %2458 = vmatpush1.bf16.msra.mxu1 %v4553_v63  ;;  %v4642_v62 = vld [vmem:[#allocation8 + $0x744] ss:$16 sps:$4 sm:$0xff]   ;;  %v4645_v63 = vld [vmem:[#allocation8 + $0x74c] ss:$16 sps:$4 sm:$0xff]  }
 0x210   :  { %2287 = vmatprep.subr.bf16.mxu0 %v4558_v0  ;;  %2459 = vmatprep.subr.bf16.mxu1 %v4561_v1  ;;  %v4640_v0 = vld [vmem:[#allocation8 + $0x740] ss:$16 sps:$4 sm:$0xff]   ;;  %v4643_v1 = vld [vmem:[#allocation8 + $0x748] ss:$16 sps:$4 sm:$0xff]  }
 0x213   :  { %2288 = vmatpush1.bf16.msra.mxu0 %v4556_v2  ;;  %2460 = vmatpush1.bf16.msra.mxu1 %v4559_v3  ;;  %v4648_v2 = vld [vmem:[#allocation8 + $0x764] ss:$16 sps:$4 sm:$0xff]   ;;  %v4651_v3 = vld [vmem:[#allocation8 + $0x76c] ss:$16 sps:$4 sm:$0xff]  }
 0x214   :  { %2289 = vmatprep.subr.bf16.mxu0 %v4564_v4  ;;  %2461 = vmatprep.subr.bf16.mxu1 %v4567_v5  ;;  %v4646_v4 = vld [vmem:[#allocation8 + $0x760] ss:$16 sps:$4 sm:$0xff]   ;;  %v4649_v5 = vld [vmem:[#allocation8 + $0x768] ss:$16 sps:$4 sm:$0xff]  }
 0x217   :  { %2290 = vmatpush1.bf16.msra.mxu0 %v4562_v53  ;;  %2462 = vmatpush1.bf16.msra.mxu1 %v4565_v6  ;;  %v4654_v53 = vld [vmem:[#allocation8 + $0x784] ss:$16 sps:$4 sm:$0xff]   ;;  %v4657_v6 = vld [vmem:[#allocation8 + $0x78c] ss:$16 sps:$4 sm:$0xff]  }
 0x218   :  { %2291 = vmatprep.subr.bf16.mxu0 %v4570_v8  ;;  %2463 = vmatprep.subr.bf16.mxu1 %v4573_v9  ;;  %v4652_v8 = vld [vmem:[#allocation8 + $0x780] ss:$16 sps:$4 sm:$0xff]   ;;  %v4655_v9 = vld [vmem:[#allocation8 + $0x788] ss:$16 sps:$4 sm:$0xff]  }
 0x21b   :  { %2292 = vmatpush1.bf16.msra.mxu0 %v4568_v11  ;;  %2464 = vmatpush1.bf16.msra.mxu1 %v4571_v12  ;;  %v4660_v11 = vld [vmem:[#allocation8 + $0x7a4] ss:$16 sps:$4 sm:$0xff]   ;;  %v4663_v12 = vld [vmem:[#allocation8 + $0x7ac] ss:$16 sps:$4 sm:$0xff]  }
 0x21c   :  { %2293 = vmatprep.subr.bf16.mxu0 %v4576_v13  ;;  %2465 = vmatprep.subr.bf16.mxu1 %v4579_v14  ;;  %v4658_v13 = vld [vmem:[#allocation8 + $0x7a0] ss:$16 sps:$4 sm:$0xff]   ;;  %v4661_v14 = vld [vmem:[#allocation8 + $0x7a8] ss:$16 sps:$4 sm:$0xff]  }
 0x21f   :  { %2294 = vmatpush1.bf16.msra.mxu0 %v4574_v15  ;;  %2466 = vmatpush1.bf16.msra.mxu1 %v4577_v16  ;;  %v4666_v15 = vld [vmem:[#allocation8 + $0x7c4] ss:$16 sps:$4 sm:$0xff]   ;;  %v4669_v16 = vld [vmem:[#allocation8 + $0x7cc] ss:$16 sps:$4 sm:$0xff]  }
 0x220   :  { %2306 = vmatprep.subr.bf16.mxu0 %v4582_v17  ;;  %2478 = vmatprep.subr.bf16.mxu1 %v4585_v18  ;;  %v4664_v17 = vld [vmem:[#allocation8 + $0x7c0] ss:$16 sps:$4 sm:$0xff]   ;;  %v4667_v18 = vld [vmem:[#allocation8 + $0x7c8] ss:$16 sps:$4 sm:$0xff]  }
 0x222   :  { %2296 = vmatmul.mubr.bf16.vlgmr.msra.gmra.mrb[8].mxu0 %v5353_v49  ;;  %2468 = vmatmul.mubr.bf16.vlgmr.msra.gmra.mrb[8].mxu1 %v5353_v49  ;;  %v4603_v49 = vld [vmem:[#allocation8 + $0x66c] ss:$16 sps:$4 sm:$0xff]  }
 0x223   :  { %2307 = vmatpush1.bf16.msra.mxu0 %v4580_v19  ;;  %2479 = vmatpush1.bf16.msra.mxu1 %v4583_v20  ;;  %v4672_v19 = vld [vmem:[#allocation8 + $0x7e4] ss:$16 sps:$4 sm:$0xff]   ;;  %v4675_v20 = vld [vmem:[#allocation8 + $0x7ec] ss:$16 sps:$4 sm:$0xff]  }
 0x224   :  { %2308 = vmatprep.subr.bf16.mxu0 %v4588_v21  ;;  %2480 = vmatprep.subr.bf16.mxu1 %v4591_v32  ;;  %v4670_v21 = vld [vmem:[#allocation8 + $0x7e0] ss:$16 sps:$4 sm:$0xff]   ;;  %v4673_v32 = vld [vmem:[#allocation8 + $0x7e8] ss:$16 sps:$4 sm:$0xff]  }
 0x225   :  { %2338 = vmatprep.mubr.bf16.mxu0 %v5363_v10  ;;  %2510 = vmatprep.mubr.bf16.mxu1 %v5363_v10  ;;  %v4607_v10 = vld [vmem:[#allocation8 + $0x688] ss:$16 sps:$4 sm:$0xff]  }
 0x227   :  { %2309 = vmatpush1.bf16.msra.mxu0 %v4586_v22  ;;  %2481 = vmatpush1.bf16.msra.mxu1 %v4589_v23  ;;  %v4678_v22 = vld [vmem:[#allocation13 + $0x4] ss:$12 sps:$4 sm:$0xff]   ;;  %v4703_v23 = vld [vmem:[#allocation13 + $0xc8] ss:$12 sps:$4 sm:$0xff]  }
 0x228   :  { %2310 = vmatprep.subr.bf16.mxu0 %v4594_v24  ;;  %2482 = vmatprep.subr.bf16.mxu1 %v4597_v25  ;;  %v4676_v24 = vld [vmem:[#allocation13] ss:$12 sps:$4 sm:$0xff]   ;;  %v4704_v25 = vld [vmem:[#allocation13 + $0x8] ss:$12 sps:$4 sm:$0xff]  }
 0x22b   :  { %2311 = vmatpush1.bf16.msra.mxu0 %v4592_v26  ;;  %2483 = vmatpush1.bf16.msra.mxu1 %v4595_v58  ;;  %v4681_v26 = vld [vmem:[#allocation13 + $0x1c] ss:$12 sps:$4 sm:$0xff]   ;;  %v4708_v58 = vld [vmem:[#allocation13 + $0xe0] ss:$12 sps:$4 sm:$0xff]  }
 0x22c   :  { %2312 = vmatprep.subr.bf16.mxu0 %v4600_v27  ;;  %2484 = vmatprep.subr.bf16.mxu1 %v4603_v49  ;;  %v4679_v27 = vld [vmem:[#allocation13 + $0x18] ss:$12 sps:$4 sm:$0xff]   ;;  %v4709_v49 = vld [vmem:[#allocation13 + $0x20] ss:$12 sps:$4 sm:$0xff]  }
 0x22f   :  { %2313 = vmatpush1.bf16.msra.mxu0 %v4598_v28  ;;  %2485 = vmatpush1.bf16.msra.mxu1 %v4601_v29  ;;  %v4684_v28 = vld [vmem:[#allocation13 + $0x34] ss:$12 sps:$4 sm:$0xff]   ;;  %v4713_v29 = vld [vmem:[#allocation13 + $0xf8] ss:$12 sps:$4 sm:$0xff]  }
 0x230   :  { %2314 = vmatprep.subr.bf16.mxu0 %v4606_v30  ;;  %2486 = vmatprep.subr.bf16.mxu1 %v4609_v31  ;;  %v4682_v30 = vld [vmem:[#allocation13 + $0x30] ss:$12 sps:$4 sm:$0xff]   ;;  %v4714_v31 = vld [vmem:[#allocation13 + $0x38] ss:$12 sps:$4 sm:$0xff]  }
 0x233   :  { %2315 = vmatpush1.bf16.msra.mxu0 %v4604_v33  ;;  %2487 = vmatpush1.bf16.msra.mxu1 %v4607_v10  ;;  %v4687_v33 = vld [vmem:[#allocation13 + $0x4c] ss:$12 sps:$4 sm:$0xff]   ;;  %v4718_v10 = vld [vmem:[#allocation13 + $0x110] ss:$12 sps:$4 sm:$0xff]  }
 0x234   :  { %2316 = vmatprep.subr.bf16.mxu0 %v4612_v34  ;;  %2488 = vmatprep.subr.bf16.mxu1 %v4615_v35  ;;  %v4685_v34 = vld [vmem:[#allocation13 + $0x48] ss:$12 sps:$4 sm:$0xff]   ;;  %v4690_v35 = vld [vmem:[#allocation13 + $0x64] ss:$12 sps:$4 sm:$0xff]  }
 0x237   :  { %2317 = vmatpush1.bf16.msra.mxu0 %v4610_v36  ;;  %2489 = vmatpush1.bf16.msra.mxu1 %v4613_v37  ;;  %v4723_v36 = vld [vmem:[#allocation13 + $0x128] ss:$12 sps:$4 sm:$0xff]   ;;  %v4688_v37 = vld [vmem:[#allocation13 + $0x60] ss:$12 sps:$4 sm:$0xff]  }
 0x238   :  { %2318 = vmatprep.subr.bf16.mxu0 %v4618_v38  ;;  %2490 = vmatprep.subr.bf16.mxu1 %v4621_v39  ;;  %v4724_v38 = vld [vmem:[#allocation13 + $0x68] ss:$12 sps:$4 sm:$0xff]  }
 0x239   :  { %v4693_v39 = vld [vmem:[#allocation13 + $0x7c] ss:$12 sps:$4 sm:$0xff]  }
 0x23b   :  { %2319 = vmatpush1.bf16.msra.mxu0 %v4616_v40  ;;  %2491 = vmatpush1.bf16.msra.mxu1 %v4619_v41  ;;  %v4728_v40 = vld [vmem:[#allocation13 + $0x140] ss:$12 sps:$4 sm:$0xff]   ;;  %v4691_v41 = vld [vmem:[#allocation13 + $0x78] ss:$12 sps:$4 sm:$0xff]  }
 0x23c   :  { %2320 = vmatprep.subr.bf16.mxu0 %v4624_v42  ;;  %2492 = vmatprep.subr.bf16.mxu1 %v4627_v43  ;;  %v4729_v42 = vld [vmem:[#allocation13 + $0x80] ss:$12 sps:$4 sm:$0xff]  }
 0x23d   :  { %v4696_v43 = vld [vmem:[#allocation13 + $0x94] ss:$12 sps:$4 sm:$0xff]  }
 0x23f   :  { %2321 = vmatpush1.bf16.msra.mxu0 %v4622_v44  ;;  %2493 = vmatpush1.bf16.msra.mxu1 %v4625_v45  ;;  %v4694_v44 = vld [vmem:[#allocation13 + $0x90] ss:$12 sps:$4 sm:$0xff]   ;;  %v4699_v45 = vld [vmem:[#allocation13 + $0xac] ss:$12 sps:$4 sm:$0xff]  }
 0x240   :  { %2322 = vmatprep.subr.bf16.mxu0 %v4630_v46  ;;  %2494 = vmatprep.subr.bf16.mxu1 %v4633_v47  ;;  %v4697_v46 = vld [vmem:[#allocation13 + $0xa8] ss:$12 sps:$4 sm:$0xff]   ;;  %v4702_v47 = vld [vmem:[#allocation13 + $0xc4] ss:$12 sps:$4 sm:$0xff]  }
 0x243   :  { %2323 = vmatpush1.bf16.msra.mxu0 %v4628_v48  ;;  %2495 = vmatpush1.bf16.msra.mxu1 %v4631_v50  ;;  %v4700_v48 = vld [vmem:[#allocation13 + $0xc0] ss:$12 sps:$4 sm:$0xff]   ;;  %v4707_v50 = vld [vmem:[#allocation13 + $0xdc] ss:$12 sps:$4 sm:$0xff]  }
 0x244   :  { %2324 = vmatprep.subr.bf16.mxu0 %v4636_v57  ;;  %2496 = vmatprep.subr.bf16.mxu1 %v4639_v59  ;;  %v4705_v57 = vld [vmem:[#allocation13 + $0xd8] ss:$12 sps:$4 sm:$0xff]   ;;  %v4712_v59 = vld [vmem:[#allocation13 + $0xf4] ss:$12 sps:$4 sm:$0xff]  }
 0x247   :  { %2325 = vmatpush1.bf16.msra.mxu0 %v4634_v60  ;;  %2497 = vmatpush1.bf16.msra.mxu1 %v4637_v61  ;;  %v4710_v60 = vld [vmem:[#allocation13 + $0xf0] ss:$12 sps:$4 sm:$0xff]   ;;  %v4717_v61 = vld [vmem:[#allocation13 + $0x10c] ss:$12 sps:$4 sm:$0xff]  }
 0x248   :  { %2326 = vmatprep.subr.bf16.mxu0 %v4642_v62  ;;  %2498 = vmatprep.subr.bf16.mxu1 %v4645_v63  ;;  %v4715_v62 = vld [vmem:[#allocation13 + $0x108] ss:$12 sps:$4 sm:$0xff]   ;;  %v4722_v63 = vld [vmem:[#allocation13 + $0x124] ss:$12 sps:$4 sm:$0xff]  }
 0x24b   :  { %2327 = vmatpush1.bf16.msra.mxu0 %v4640_v0  ;;  %2499 = vmatpush1.bf16.msra.mxu1 %v4643_v1  ;;  %v4720_v0 = vld [vmem:[#allocation13 + $0x120] ss:$12 sps:$4 sm:$0xff]   ;;  %v4727_v1 = vld [vmem:[#allocation13 + $0x13c] ss:$12 sps:$4 sm:$0xff]  }
 0x24c   :  { %2328 = vmatprep.subr.bf16.mxu0 %v4648_v2  ;;  %2500 = vmatprep.subr.bf16.mxu1 %v4651_v3  ;;  %v4725_v2 = vld [vmem:[#allocation13 + $0x138] ss:$12 sps:$4 sm:$0xff]   ;;  %v4732_v3 = vld [vmem:[#allocation13 + $0x154] ss:$12 sps:$4 sm:$0xff]  }
 0x24f   :  { %2329 = vmatpush1.bf16.msra.mxu0 %v4646_v4  ;;  %2501 = vmatpush1.bf16.msra.mxu1 %v4649_v5  ;;  %v4733_v4 = vld [vmem:[#allocation13 + $0x158] ss:$12 sps:$4 sm:$0xff]   ;;  %v4730_v5 = vld [vmem:[#allocation13 + $0x150] ss:$12 sps:$4 sm:$0xff]  }
 0x250   :  { %2330 = vmatprep.subr.bf16.mxu0 %v4654_v53  ;;  %2502 = vmatprep.subr.bf16.mxu1 %v4657_v6  ;;  %v4734_v53 = vld [vmem:[#allocation13 + $0x98] ss:$12 sps:$4 sm:$0xff]  }
 0x251   :  { %v4737_v6 = vld [vmem:[#allocation13 + $0x16c] ss:$12 sps:$4 sm:$0xff]  }
 0x253   :  { %2331 = vmatpush1.bf16.msra.mxu0 %v4652_v8  ;;  %2503 = vmatpush1.bf16.msra.mxu1 %v4655_v9  ;;  %v4738_v8 = vld [vmem:[#allocation13 + $0x170] ss:$12 sps:$4 sm:$0xff]   ;;  %v4735_v9 = vld [vmem:[#allocation13 + $0x168] ss:$12 sps:$4 sm:$0xff]  }
 0x254   :  { %2332 = vmatprep.subr.bf16.mxu0 %v4660_v11  ;;  %2504 = vmatprep.subr.bf16.mxu1 %v4663_v12  ;;  %v4739_v11 = vld [vmem:[#allocation13 + $0xb0] ss:$12 sps:$4 sm:$0xff]  }
 0x255   :  { %v4742_v12 = vld [vmem:[#allocation13 + $0x184] ss:$12 sps:$4 sm:$0xff]  }
 0x257   :  { %2333 = vmatpush1.bf16.msra.mxu0 %v4658_v13  ;;  %2505 = vmatpush1.bf16.msra.mxu1 %v4661_v14  ;;  %v4743_v13 = vld [vmem:[#allocation13 + $0x248] ss:$12 sps:$4 sm:$0xff]   ;;  %v2521_v14 = vld [vmem:[#allocation11] sm:$0xf] }
 0x258   :  { %2334 = vmatprep.subr.bf16.mxu0 %v4666_v15  ;;  %2506 = vmatprep.subr.bf16.mxu1 %v4669_v16  ;;  %v2526_v15 = vrot.slane %v2521_v14, %v5327_v52  ;;  %v2534_v16 = vrot.slane %v2521_v14, %v5335_v55 }
 0x25b   :  { %2335 = vmatpush1.bf16.msra.mxu0 %v4664_v17  ;;  %2507 = vmatpush1.bf16.msra.mxu1 %v4667_v18  ;;  %v2530_v17 = vrot.slane %v2521_v14, %v5332_v54  ;;  %v2538_v18 = vrot.slane %v2521_v14, %v196_v56  ;;  %v4775_v14 = vld [vmem:[#allocation13 + $0x228] ss:$12 sps:$4 sm:$0xff]  }
 0x25c   :  { %2336 = vmatprep.subr.bf16.mxu0 %v4672_v19  ;;  %2508 = vmatprep.subr.bf16.mxu1 %v4675_v20 }
 0x25f   :  { %2337 = vmatpush1.bf16.msra.mxu0 %v4670_v21  ;;  %2509 = vmatpush1.bf16.msra.mxu1 %v4673_v32 }
 0x260   :  { %3220 = vmatprep.subr.bf16.mxu0 %v4678_v22  ;;  %4115 = vmatprep.subr.bf16.mxu1 %v4703_v23 }
 0x262   :  { %2339 = vmatmul.mubr.bf16.vlgmr.msra.gmra.mrb[8].mxu0 %v5361_v7  ;;  %2511 = vmatmul.mubr.bf16.vlgmr.msra.gmra.mrb[8].mxu1 %v5361_v7  ;;  %v4719_v7 = vld [vmem:[#allocation13 + $0x50] ss:$12 sps:$4 sm:$0xff]  }
 0x263   :  { %3221 = vmatpush1.bf16.msra.mxu0 %v4676_v24  ;;  %4116 = vmatpush3.bf16.msra.mxu1 %v4704_v25 }
 0x264   :  { %3222 = vmatprep.subr.bf16.mxu0 %v4681_v26  ;;  %4117 = vmatprep.subr.bf16.mxu1 %v4708_v58 }
 0x267   :  { %3223 = vmatpush1.bf16.msra.mxu0 %v4679_v27  ;;  %4118 = vmatpush3.bf16.msra.mxu1 %v4709_v49 }
 0x268   :  { %3224 = vmatprep.subr.bf16.mxu0 %v4684_v28  ;;  %4119 = vmatprep.subr.bf16.mxu1 %v4713_v29 }
 0x26b   :  { %3225 = vmatpush1.bf16.msra.mxu0 %v4682_v30  ;;  %4120 = vmatpush3.bf16.msra.mxu1 %v4714_v31 }
 0x26c   :  { %3226 = vmatprep.subr.bf16.mxu0 %v4687_v33  ;;  %4121 = vmatprep.subr.bf16.mxu1 %v4718_v10 }
 0x26f   :  { %3227 = vmatpush1.bf16.msra.mxu0 %v4685_v34  ;;  %4122 = vmatpush3.bf16.msra.mxu1 %v4719_v7 }
 0x270   :  { %3228 = vmatprep.subr.bf16.mxu0 %v4690_v35  ;;  %4123 = vmatprep.subr.bf16.mxu1 %v4723_v36 }
 0x273   :  { %3229 = vmatpush1.bf16.msra.mxu0 %v4688_v37  ;;  %4124 = vmatpush3.bf16.msra.mxu1 %v4724_v38 }
 0x274   :  { %3230 = vmatprep.subr.bf16.mxu0 %v4693_v39  ;;  %4125 = vmatprep.subr.bf16.mxu1 %v4728_v40 }
 0x277   :  { %3231 = vmatpush1.bf16.msra.mxu0 %v4691_v41  ;;  %4126 = vmatpush3.bf16.msra.mxu1 %v4729_v42  ;;  %v4740_v41 = vld [vmem:[#allocation13 + $0x180] ss:$12 sps:$4 sm:$0xff]   ;;  %v4744_v42 = vld [vmem:[#allocation13 + $0x188] ss:$12 sps:$4 sm:$0xff]  }
 0x278   :  { %3232 = vmatprep.subr.bf16.mxu0 %v4696_v43  ;;  %4127 = vmatprep.subr.bf16.mxu1 %v4733_v4  ;;  %v4747_v43 = vld [vmem:[#allocation13 + $0x19c] ss:$12 sps:$4 sm:$0xff]   ;;  %v4768_v4 = vld [vmem:[#allocation13 + $0x2c0] ss:$12 sps:$4 sm:$0xff]  }
 0x27b   :  { %3233 = vmatpush1.bf16.msra.mxu0 %v4694_v44  ;;  %4128 = vmatpush3.bf16.msra.mxu1 %v4734_v53  ;;  %v4748_v44 = vld [vmem:[#allocation13 + $0x260] ss:$12 sps:$4 sm:$0xff]  }
 0x27c   :  { %3234 = vmatprep.subr.bf16.mxu0 %v4699_v45  ;;  %4129 = vmatprep.subr.bf16.mxu1 %v4738_v8  ;;  %v4745_v45 = vld [vmem:[#allocation13 + $0x198] ss:$12 sps:$4 sm:$0xff]   ;;  %v4769_v53 = vld [vmem:[#allocation13 + $0x200] ss:$12 sps:$4 sm:$0xff]  }
 0x27d   :  { %v4773_v8 = vld [vmem:[#allocation13 + $0x2d8] ss:$12 sps:$4 sm:$0xff]  }
 0x27f   :  { %3235 = vmatpush1.bf16.msra.mxu0 %v4697_v46  ;;  %4130 = vmatpush3.bf16.msra.mxu1 %v4739_v11  ;;  %v4749_v46 = vld [vmem:[#allocation13 + $0x1a0] ss:$12 sps:$4 sm:$0xff]   ;;  %v4774_v11 = vld [vmem:[#allocation13 + $0x218] ss:$12 sps:$4 sm:$0xff]  }
 0x280   :  { %3236 = vmatprep.subr.bf16.mxu0 %v4702_v47  ;;  %4137 = vmatprep.subr.bf16.mxu1 %v4743_v13  ;;  %v4752_v47 = vld [vmem:[#allocation13 + $0x1b4] ss:$12 sps:$4 sm:$0xff]   ;;  %v4778_v13 = vld [vmem:[#allocation13 + $0x2f0] ss:$12 sps:$4 sm:$0xff]  }
 0x283   :  { %3237 = vmatpush1.bf16.msra.mxu0 %v4700_v48  ;;  %v4753_v48 = vld [vmem:[#allocation13 + $0x278] ss:$12 sps:$4 sm:$0xff]  }
 0x284   :  { %3238 = vmatprep.subr.bf16.mxu0 %v4707_v50  ;;  %v4750_v50 = vld [vmem:[#allocation13 + $0x1b0] ss:$12 sps:$4 sm:$0xff]  }
 0x287   :  { %3239 = vmatpush1.bf16.msra.mxu0 %v4705_v57  ;;  %v4754_v57 = vld [vmem:[#allocation13 + $0x1b8] ss:$12 sps:$4 sm:$0xff]  }
 0x288   :  { %3240 = vmatprep.subr.bf16.mxu0 %v4712_v59  ;;  %v4757_v59 = vld [vmem:[#allocation13 + $0x1cc] ss:$12 sps:$4 sm:$0xff]  }
 0x28b   :  { %3241 = vmatpush1.bf16.msra.mxu0 %v4710_v60  ;;  %v4758_v60 = vld [vmem:[#allocation13 + $0x290] ss:$12 sps:$4 sm:$0xff]  }
 0x28c   :  { %3242 = vmatprep.subr.bf16.mxu0 %v4717_v61  ;;  %v4755_v61 = vld [vmem:[#allocation13 + $0x1c8] ss:$12 sps:$4 sm:$0xff]  }
 0x28f   :  { %3243 = vmatpush1.bf16.msra.mxu0 %v4715_v62  ;;  %v4759_v62 = vld [vmem:[#allocation13 + $0x1d0] ss:$12 sps:$4 sm:$0xff]  }
 0x290   :  { %3244 = vmatprep.subr.bf16.mxu0 %v4722_v63  ;;  %v4762_v63 = vld [vmem:[#allocation13 + $0x1e4] ss:$12 sps:$4 sm:$0xff]  }
 0x293   :  { %3245 = vmatpush1.bf16.msra.mxu0 %v4720_v0  ;;  %v4763_v0 = vld [vmem:[#allocation13 + $0x2a8] ss:$12 sps:$4 sm:$0xff]  }
 0x294   :  { %3246 = vmatprep.subr.bf16.mxu0 %v4727_v1  ;;  %v4760_v1 = vld [vmem:[#allocation13 + $0x1e0] ss:$12 sps:$4 sm:$0xff]  }
 0x297   :  { %3247 = vmatpush1.bf16.msra.mxu0 %v4725_v2  ;;  %v4764_v2 = vld [vmem:[#allocation13 + $0x1e8] ss:$12 sps:$4 sm:$0xff]  }
 0x298   :  { %3248 = vmatprep.subr.bf16.mxu0 %v4732_v3  ;;  %v4767_v3 = vld [vmem:[#allocation13 + $0x1fc] ss:$12 sps:$4 sm:$0xff]  }
 0x29b   :  { %3249 = vmatpush1.bf16.msra.mxu0 %v4730_v5  ;;  %v4765_v5 = vld [vmem:[#allocation13 + $0x1f8] ss:$12 sps:$4 sm:$0xff]  }
 0x29c   :  { %3250 = vmatprep.subr.bf16.mxu0 %v4737_v6  ;;  %v4772_v6 = vld [vmem:[#allocation13 + $0x214] ss:$12 sps:$4 sm:$0xff]  }
 0x29f   :  { %3251 = vmatpush1.bf16.msra.mxu0 %v4735_v9  ;;  %v4770_v9 = vld [vmem:[#allocation13 + $0x210] ss:$12 sps:$4 sm:$0xff]  }
 0x2a0   :  { %3263 = vmatprep.subr.bf16.mxu0 %v4742_v12  ;;  %v4777_v12 = vld [vmem:[#allocation13 + $0x22c] ss:$12 sps:$4 sm:$0xff]  }
 0x335   :  { %v2340_v19 = vpop.f32.mrb[8].mxu0  ;;  %v2512_v20 = vpop.f32.mrb[8].mxu1 }
 0x336   :  { %v2543_v21 = vadd.f32 %v2526_v15, %v2340_v19  ;;  %v2545_v32 = vadd.f32 %v2534_v16, %v2512_v20  ;;  %v2342_v22 = vpop.f32.mrb[9].mxu0  ;;  %v2514_v23 = vpop.f32.mrb[9].mxu1  ;;  %v4783_v19 = vld [vmem:[#allocation13 + $0x258] ss:$12 sps:$4 sm:$0xff]   ;;  %v4788_v20 = vld [vmem:[#allocation13 + $0x274] ss:$12 sps:$4 sm:$0xff]  }
 0x337   :  { %v2544_v24 = vadd.f32 %v2530_v17, %v2342_v22  ;;  %v2546_v25 = vadd.f32 %v2538_v18, %v2514_v23  ;;  %v2344_v26 = vpop.f32.mrb[10].mxu0  ;;  %v2516_v58 = vpop.f32.mrb[10].mxu1  ;;  %v4789_v22 = vld [vmem:[#allocation13 + $0x288] ss:$12 sps:$4 sm:$0xff]   ;;  %v4794_v23 = vld [vmem:[#allocation13 + $0x2a4] ss:$12 sps:$4 sm:$0xff]  }
 0x338   :  { %v2547_v27 = vadd.f32 %v2526_v15, %v2344_v26  ;;  %v2549_v49 = vadd.f32 %v2534_v16, %v2516_v58  ;;  %v2346_v28 = vpop.f32.mrb[11].mxu0  ;;  %v2518_v29 = vpop.f32.mrb[11].mxu1  ;;  %v2551_v33 = vmax.f32 %v2543_v21, 0.0  ;;  %v2553_v10 = vmax.f32 %v2545_v32, 0.0  ;;  %v4779_v15 = vld [vmem:[#allocation13 + $0x230] ss:$12 sps:$4 sm:$0xff]  }
 0x339   :  { %v2548_v30 = vadd.f32 %v2530_v17, %v2346_v28  ;;  %v2550_v31 = vadd.f32 %v2538_v18, %v2518_v29  ;;  %v2552_v34 = vmax.f32 %v2544_v24, 0.0  ;;  %v2554_v7 = vmax.f32 %v2546_v25, 0.0  ;;  %v4782_v16 = vld [vmem:[#allocation13 + $0x244] ss:$12 sps:$4 sm:$0xff]   ;;  %v4780_v17 = vld [vmem:[#allocation13 + $0x240] ss:$12 sps:$4 sm:$0xff]  }
 0x33a   :  { %v2555_v51 = vmax.f32 %v2547_v27, 0.0  ;;  %v2557_v56 = vmax.f32 %v2549_v49, 0.0  ;;  %v4785_v18 = vld [vmem:[#allocation13 + $0x25c] ss:$12 sps:$4 sm:$0xff]   ;;  %v4791_v32 = vld [vmem:[#allocation13 + $0x28c] ss:$12 sps:$4 sm:$0xff]  }
 0x33b   :  { %v2556_v35 = vmax.f32 %v2548_v30, 0.0  ;;  %v2558_v36 = vmax.f32 %v2550_v31, 0.0  ;;  %v4786_v21 = vld [vmem:[#allocation13 + $0x270] ss:$12 sps:$4 sm:$0xff]   ;;  %v4792_v24 = vld [vmem:[#allocation13 + $0x2a0] ss:$12 sps:$4 sm:$0xff]  }
 0x33c   :  { %v2559_v37 = vpack.c.bf16 %v2555_v51, %v2551_v33  ;;  %v5380_v38 = vpack.c.bf16 %v2557_v56, %v2553_v10  ;;  %v4797_v25 = vld [vmem:[#allocation13 + $0x2bc] ss:$12 sps:$4 sm:$0xff]   ;;  %v4795_v26 = vld [vmem:[#allocation13 + $0x2b8] ss:$12 sps:$4 sm:$0xff]   ;;  %v4800_v58 = vld [vmem:[#allocation13 + $0x2d4] ss:$12 sps:$4 sm:$0xff]  }
 0x33d   :  { %v2560_v39 = vpack.c.bf16 %v2556_v35, %v2552_v34  ;;  %v2562_v40 = vpack.c.bf16 %v2558_v36, %v2554_v7  ;;  %v4798_v27 = vld [vmem:[#allocation13 + $0x2d0] ss:$12 sps:$4 sm:$0xff]   ;;  %v4803_v49 = vld [vmem:[#allocation13 + $0x2ec] ss:$12 sps:$4 sm:$0xff]   ;;  %v4801_v28 = vld [vmem:[#allocation13 + $0x2e8] ss:$12 sps:$4 sm:$0xff]  }
 0x33e   :  { %v4804_v29 = vld [vmem:[#allocation16 + $0x40] sm:$0xff]   ;;  %v4806_v31 = vld [vmem:[#allocation16 + $0x48] sm:$0xff]   ;;  %v4808_v10 = vld [vmem:[#allocation16 + $0x50] sm:$0xff]  }
 0x33f   :  { %3252 = vmatprep.mubr.bf16.mxu0 %v2560_v39  ;;  %3338 = vmatprep.mubr.bf16.mxu1 %v2560_v39  ;;  %v4805_v30 = vld [vmem:[#allocation16] sm:$0xff]   ;;  %v4807_v33 = vld [vmem:[#allocation16 + $0x8] sm:$0xff]   ;;  %v4809_v51 = vld [vmem:[#allocation16 + $0x10] sm:$0xff]  }
 0x340   :  { %3253 = vmatmul.mubr.bf16.vlgmr.msra.gmra.mrb[12].mxu0 %v2559_v37  ;;  %3339 = vmatmul.mubr.bf16.vlgmr.msra.gmra.mrb[12].mxu1 %v2559_v37  ;;  %v4810_v56 = vld [vmem:[#allocation16 + $0x58] sm:$0xff]   ;;  %v4812_v7 = vld [vmem:[#allocation16 + $0x60] sm:$0xff]   ;;  %v4814_v36 = vld [vmem:[#allocation16 + $0x68] sm:$0xff]  }
 0x341   :  { %3264 = vmatpush1.bf16.msra.mxu0 %v4740_v41  ;;  %4138 = vmatpush3.bf16.msra.mxu1 %v4744_v42  ;;  %v4811_v34 = vld [vmem:[#allocation16 + $0x18] sm:$0xff]   ;;  %v4813_v35 = vld [vmem:[#allocation16 + $0x20] sm:$0xff]   ;;  %v4815_v37 = vld [vmem:[#allocation16 + $0x28] sm:$0xff]   ;;  %v5105_v42 = vmov 0.0  }
 0x342   :  { %3295 = vmatprep.mubr.bf16.mxu0 %v2562_v40  ;;  %3379 = vmatprep.mubr.bf16.mxu1 %v2562_v40  ;;  %v4817_v39 = vld [vmem:[#allocation16 + $0x30] sm:$0xff]   ;;  %v4818_v40 = vld [vmem:[#allocation16 + $0x78] sm:$0xff]  }
 0x343   :  { %3265 = vmatprep.subr.bf16.mxu0 %v4747_v43  ;;  %4139 = vmatprep.subr.bf16.mxu1 %v4748_v44  ;;  %v4819_v41 = vld [vmem:[#allocation16 + $0x38] sm:$0xff]  }
 0x345   :  { %3266 = vmatpush1.bf16.msra.mxu0 %v4745_v45  ;;  %4140 = vmatpush3.bf16.msra.mxu1 %v4749_v46 }
 0x346   :  { %3267 = vmatprep.subr.bf16.mxu0 %v4752_v47  ;;  %4141 = vmatprep.subr.bf16.mxu1 %v4753_v48 }
 0x349   :  { %3268 = vmatpush1.bf16.msra.mxu0 %v4750_v50  ;;  %4142 = vmatpush3.bf16.msra.mxu1 %v4754_v57  ;;  %v2691_v50 = vld [vmem:[#allocation14] sm:$0x7] }
 0x34a   :  { %3269 = vmatprep.subr.bf16.mxu0 %v4757_v59  ;;  %4143 = vmatprep.subr.bf16.mxu1 %v4758_v60  ;;  %v2704_v57 = vrot.slane %v2691_v50, %v5335_v55 }
 0x34d   :  { %3270 = vmatpush1.bf16.msra.mxu0 %v4755_v61  ;;  %4144 = vmatpush3.bf16.msra.mxu1 %v4759_v62 }
 0x34e   :  { %3271 = vmatprep.subr.bf16.mxu0 %v4762_v63  ;;  %4145 = vmatprep.subr.bf16.mxu1 %v4763_v0 }
 0x351   :  { %3272 = vmatpush1.bf16.msra.mxu0 %v4760_v1  ;;  %4146 = vmatpush3.bf16.msra.mxu1 %v4764_v2 }
 0x352   :  { %3273 = vmatprep.subr.bf16.mxu0 %v4767_v3  ;;  %4147 = vmatprep.subr.bf16.mxu1 %v4768_v4 }
 0x355   :  { %3274 = vmatpush1.bf16.msra.mxu0 %v4765_v5  ;;  %4148 = vmatpush3.bf16.msra.mxu1 %v4769_v53 }
 0x356   :  { %3275 = vmatprep.subr.bf16.mxu0 %v4772_v6  ;;  %4149 = vmatprep.subr.bf16.mxu1 %v4773_v8  ;;  %v2696_v8 = vrot.slane %v2691_v50, %v5327_v52  ;;  %v4821_v52 = vld [vmem:[#allocation16 + $0x88] sm:$0xff]  }
 0x359   :  { %3276 = vmatpush1.bf16.msra.mxu0 %v4770_v9  ;;  %4150 = vmatpush3.bf16.msra.mxu1 %v4774_v11  ;;  %v2700_v9 = vrot.slane %v2691_v50, %v5332_v54  ;;  %v4822_v54 = vld [vmem:[#allocation16 + $0x90] sm:$0xff]  }
 0x35a   :  { %3277 = vmatprep.subr.bf16.mxu0 %v4777_v12  ;;  %4151 = vmatprep.subr.bf16.mxu1 %v4778_v13 }
 0x35d   :  { %3278 = vmatpush1.bf16.msra.mxu0 %v4775_v14  ;;  %4152 = vmatpush3.bf16.msra.mxu1 %v4779_v15 }
 0x35e   :  { %3279 = vmatprep.subr.bf16.mxu0 %v4782_v16  ;;  %4159 = vmatprep.subr.bf16.mxu1 %v4804_v29 }
 0x360   :  { %3380 = vmatmul.mubr.bf16.vlgmr.msra.gmra.mrb[16].mxu1 %v5380_v38 }
 0x361   :  { %3280 = vmatpush1.bf16.msra.mxu0 %v4780_v17  ;;  %4160 = vmatpush3.bf16.msra.mxu1 %v4805_v30 }
 0x362   :  { %3281 = vmatprep.subr.bf16.mxu0 %v4785_v18  ;;  %4161 = vmatprep.subr.bf16.mxu1 %v4806_v31 }
 0x365   :  { %3282 = vmatpush1.bf16.msra.mxu0 %v4783_v19  ;;  %4162 = vmatpush3.bf16.msra.mxu1 %v4807_v33 }
 0x366   :  { %3283 = vmatprep.subr.bf16.mxu0 %v4788_v20  ;;  %4163 = vmatprep.subr.bf16.mxu1 %v4808_v10  ;;  %v4090_v10 = vld [vmem:[#allocation17] ss:$0 sm:$0xff] }
 0x369   :  { %3284 = vmatpush1.bf16.msra.mxu0 %v4786_v21  ;;  %4164 = vmatpush3.bf16.msra.mxu1 %v4809_v51 }
 0x36a   :  { %3285 = vmatprep.subr.bf16.mxu0 %v4791_v32  ;;  %4165 = vmatprep.subr.bf16.mxu1 %v4810_v56 }
 0x36d   :  { %3286 = vmatpush1.bf16.msra.mxu0 %v4789_v22  ;;  %4166 = vmatpush3.bf16.msra.mxu1 %v4811_v34 }
 0x36e   :  { %3287 = vmatprep.subr.bf16.mxu0 %v4794_v23  ;;  %4167 = vmatprep.subr.bf16.mxu1 %v4812_v7  ;;  %v4820_v23 = vld [vmem:[#allocation16 + $0x80] sm:$0xff]  }
 0x371   :  { %3288 = vmatpush1.bf16.msra.mxu0 %v4792_v24  ;;  %4168 = vmatpush3.bf16.msra.mxu1 %v4813_v35  ;;  %v4823_v24 = vld [vmem:[#allocation16 + $0x98] sm:$0xff]  }
 0x372   :  { %3289 = vmatprep.subr.bf16.mxu0 %v4797_v25  ;;  %4169 = vmatprep.subr.bf16.mxu1 %v4814_v36  ;;  %v4824_v25 = vld [vmem:[#allocation16 + $0xa0] sm:$0xff]  }
 0x375   :  { %3290 = vmatpush1.bf16.msra.mxu0 %v4795_v26  ;;  %4170 = vmatpush3.bf16.msra.mxu1 %v4815_v37  ;;  %v4825_v26 = vld [vmem:[#allocation16 + $0xa8] sm:$0xff]  }
 0x376   :  { %3291 = vmatprep.subr.bf16.mxu0 %v4800_v58  ;;  %v4826_v58 = vld [vmem:[#allocation16 + $0xb0] sm:$0xff]  }
 0x379   :  { %3292 = vmatpush1.bf16.msra.mxu0 %v4798_v27  ;;  %v4827_v27 = vld [vmem:[#allocation16 + $0xb8] sm:$0xff]  }
 0x37a   :  { %3293 = vmatprep.subr.bf16.mxu0 %v4803_v49 }
 0x37d   :  { %3294 = vmatpush1.bf16.msra.mxu0 %v4801_v28 }
 0x380   :  { %3296 = vmatmul.mubr.bf16.vlgmr.msra.gmra.mrb[12].mxu0 %v5380_v38  ;;  %v4816_v38 = vld [vmem:[#allocation16 + $0x70] sm:$0xff]  }
 0x381   :  { %4171 = vmatprep.subr.bf16.mxu1 %v4816_v38 }
 0x382   :  { %4172 = vmatpush3.bf16.msra.mxu1 %v4817_v39 }
 0x383   :  { %4173 = vmatprep.subr.bf16.mxu1 %v4818_v40 }
 0x386   :  { %4174 = vmatpush3.bf16.msra.mxu1 %v4819_v41 }
 0x387   :  { %4190 = vmatprep.subr.bf16.mxu1 %v5105_v42 }
 0x413   :  { %v4131_v43 = vpop.f32.mrb[12].mxu1 }
 0x414   :  { %v4132_v44 = vpop.f32.mrb[13].mxu1 }
 0x415   :  { %v4133_v45 = vadd.f32 %v4132_v44, %v4131_v43  ;;  %v4134_v46 = vpop.f32.mrb[14].mxu1 }
 0x416   :  { %v4135_v47 = vpop.f32.mrb[15].mxu1 }
 0x417   :  { %v4136_v48 = vadd.f32 %v4135_v47, %v4134_v46  ;;  %v3341_v61 = vadd.f32 %v4133_v45, %v2704_v57 }
 0x419   :  { %v3344_v1 = vadd.f32 %v4136_v48, %v2704_v57 }
 0x433   :  { %v4153_v59 = vpop.f32.mrb[16].mxu1 }
 0x434   :  { %v4154_v60 = vpop.f32.mrb[17].mxu1 }
 0x435   :  { %v4155_v62 = vadd.f32 %v4154_v60, %v4153_v59  ;;  %v4156_v63 = vpop.f32.mrb[18].mxu1 }
 0x436   :  { %v4157_v0 = vpop.f32.mrb[19].mxu1 }
 0x437   :  { %v3382_v2 = vadd.f32 %v4155_v62, %v3341_v61  ;;  %v4158_v3 = vadd.f32 %v4157_v0, %v4156_v63 }
 0x439   :  { %v3385_v4 = vadd.f32 %v4158_v3, %v3344_v1  ;;  %v3390_v5 = vmax.f32 %v3382_v2, 0.0 }
 0x43b   :  { %v3393_v53 = vmax.f32 %v3385_v4, 0.0 }
 0x43d   :  { %v3396_v6 = vpack.c.bf16 %v3393_v53, %v3390_v5 }
 0x453   :  { %v3297_v11 = vpop.f32.mrb[12].mxu0 }
 0x454   :  { %v4210_v12 = vadd.f32 %v3297_v11, %v2696_v8  ;;  %v3299_v55 = vpop.f32.mrb[13].mxu0 }
 0x455   :  { %v4211_v13 = vadd.f32 %v3299_v55, %v2700_v9  ;;  %v3301_v14 = vpop.f32.mrb[14].mxu0 }
 0x456   :  { %v4212_v15 = vadd.f32 %v3301_v14, %v2696_v8  ;;  %v3303_v16 = vpop.f32.mrb[15].mxu0  ;;  %v3388_v18 = vmax.f32 %v4210_v12, 0.0 }
 0x457   :  { %v4213_v17 = vadd.f32 %v3303_v16, %v2700_v9  ;;  %v3389_v20 = vmax.f32 %v4211_v13, 0.0 }
 0x458   :  { %v3391_v19 = vmax.f32 %v4212_v15, 0.0 }
 0x459   :  { %v3392_v21 = vmax.f32 %v4213_v17, 0.0 }
 0x45a   :  { %v3394_v32 = vpack.c.bf16 %v3391_v19, %v3388_v18 }
 0x45b   :  { %v3395_v22 = vpack.c.bf16 %v3392_v21, %v3389_v20 }
 0x45d   :  { %3628 = vmatprep.mubr.bf16.mxu1 %v3395_v22 }
 0x45e   :  { %3629 = vmatmul.mubr.bf16.vlgmr.msra.gmra.mrb[20].mxu1 %v3394_v32 }
 0x45f   :  { %4191 = vmatpush3.bf16.msra.mxu1 %v4820_v23  ;;  %4206 = vmatprep.mubr.msk.bf16.mxu1 %vm5106_vm2, %v5105_v42 }
 0x460   :  { %4192 = vmatprep.subr.bf16.mxu1 %v5105_v42 }
 0x463   :  { %4193 = vmatpush3.bf16.msra.mxu1 %v4821_v52 }
 0x464   :  { %4194 = vmatprep.subr.bf16.mxu1 %v5105_v42 }
 0x467   :  { %4195 = vmatpush3.bf16.msra.mxu1 %v4822_v54 }
 0x468   :  { %4196 = vmatprep.subr.bf16.mxu1 %v5105_v42 }
 0x46b   :  { %4197 = vmatpush3.bf16.msra.mxu1 %v4823_v24 }
 0x46c   :  { %4198 = vmatprep.subr.bf16.mxu1 %v5105_v42 }
 0x46f   :  { %4199 = vmatpush3.bf16.msra.mxu1 %v4824_v25 }
 0x470   :  { %4200 = vmatprep.subr.bf16.mxu1 %v5105_v42 }
 0x473   :  { %4201 = vmatpush3.bf16.msra.mxu1 %v4825_v26 }
 0x474   :  { %4202 = vmatprep.subr.bf16.mxu1 %v5105_v42 }
 0x477   :  { %4203 = vmatpush3.bf16.msra.mxu1 %v4826_v58 }
 0x478   :  { %4204 = vmatprep.subr.bf16.mxu1 %v5105_v42 }
 0x47b   :  { %4205 = vmatpush3.bf16.msra.mxu1 %v4827_v27 }
 0x47e   :  { %4207 = vmatmul.mubr.bf16.vlgmr.msra.gmra.mrb[24].mxu1 %v3396_v6 }
 0x531   :  { %v4175_v49 = vpop.f32.mrb[20].mxu1 }
 0x532   :  { %v4176_v28 = vpop.f32.mrb[21].mxu1 }
 0x533   :  { %v4177_v29 = vadd.f32 %v4176_v28, %v4175_v49  ;;  %v4178_v30 = vpop.f32.mrb[22].mxu1 }
 0x534   :  { %v4179_v31 = vpop.f32.mrb[23].mxu1 }
 0x535   :  { %v4180_v33 = vadd.f32 %v4179_v31, %v4178_v30  ;;  %v3631_v51 = vadd.f32 %v4177_v29, %v4090_v10 }
 0x537   :  { %v3634_v35 = vadd.f32 %v4180_v33, %v4090_v10 }
 0x551   :  { %v3671_v56 = vpop.f32.mrb[24].mxu1 }
 0x552   :  { %v3672_v34 = vadd.f32 %v3671_v56, %v3631_v51  ;;  %v4208_v7 = vpop.f32.mrb[25].mxu1 }
 0x553   :  { %v3674_v36 = vpop.f32.mrb[26].mxu1 }
 0x554   :  { %3678 = vst [vmem:[#allocation19] sm:$0xff] %v3672_v34  ;;  %v3675_v37 = vadd.f32 %v3674_v36, %v3634_v35  ;;  %v4209_v38 = vpop.f32.mrb[27].mxu1 }
 0x556   :  { %3679 = vst [vmem:[#allocation19 + $0x8] sm:$0xff] %v3675_v37 }
 0x557   :  { %5059 = shalt.err (!%p5056_p0)
}
 0x558   :  { %s5060_s12 = scalar_lea.hbm %s5421_s10, 256 }
 0x559   :  { %p5061_p1 = scmp.ne.s32.totalorder %s5421_s10, %s5060_s12  ;;  %p5064_p2 = scmp.lt.u32.totalorder %s5060_s12, %s5421_s10 }
 0x55b   :  { %p5066_p3 = pnand %p5064_p2, %p5061_p1 }
 0x55d   :  { %5069 = shalt.err (!%p5066_p3)
}
 0x55e   :  { %3691 = dma.vmem_to_hbm [thread:$0]  %s3686_s30, 256, %s5421_s10, [#allocation4], %s5093_s7, %s5093_s7, %s5094_s23  }
 0x55f   :  { %5082 = dma.done.wait [#allocation4], 256  }
 0x560   :  { %5083 = vsyncadd [#allocation4], 4294967040 }
 0x561   :  { %3695 = vsyncpa [#allocation3], 1 }
 0x562   :  { %3696 = vsyncpa [#allocation6], 1 }
 0x563   :  { %3697 = vsyncpa [#allocation9], 1 }
 0x564   :  { %3698 = vsyncpa [#allocation12], 1 }
 0x565   :  { %3699 = vsyncpa [#allocation15], 1 }
 0x566   :  { %3700 = vsyncpa [#allocation18], 1 }
 0x567   :  { %3701 = vsyncpa [#allocation4], 1 }

</bundles_post_ra>
